<compile_context>
chip_gen: v7x
topology: tpu7x:2x2x1
jax: 0.10.0
libtpu: 0.0.40
codegen_flags: <defaults>
</compile_context>

<pallas_src>
import math
from functools import partial

import jax
import jax.numpy as jnp
import numpy as np
from jax.experimental import pallas as pl
from jax.experimental.pallas import tpu as pltpu

# ---- model hyper-parameters (match the PyTorch module defaults) ----
FEATURE_DIM = 16
D_MODEL     = 64
NHEAD       = 4
HEAD_DIM    = D_MODEL // NHEAD
NUM_LAYERS  = 2
DIM_FF      = 2048          # nn.TransformerEncoderLayer default dim_feedforward
D_HALF      = D_MODEL // 2
LN_EPS      = 1e-5
MAX_LEN     = 100


def _layernorm(x, gamma, beta):
    mean = jnp.mean(x, axis=-1, keepdims=True)
    c = x - mean
    var = jnp.mean(c * c, axis=-1, keepdims=True)
    inv = jax.lax.rsqrt(var + LN_EPS)
    return c * inv * gamma + beta


def qqq_kernel(B, S,
               x_ref, pe_ref, inw_ref, inb_ref,
               wqkv_ref, bqkv_ref, wo_ref, vec_ref,
               ff1w_ref, ff1b_ref, ff2w_ref,
               h1w_ref, h1b_ref, h2w_ref, h2b_ref,
               o_ref, x_scratch):
    l = pl.program_id(0)
    bf16 = jnp.bfloat16

    # ---- step 0 prologue: input projection + positional encoding (dropout = identity) ----
    @pl.when(l == 0)
    def _():
        xin = jnp.dot(x_ref[...], inw_ref[...],
                      preferred_element_type=jnp.float32) + inb_ref[...]
        xin = (xin.reshape(B, S, D_MODEL) + pe_ref[...][None, :, :]).reshape(B * S, D_MODEL)
        x_scratch[...] = xin

    x = x_scratch[...]                               # (B*S, 64) f32 residual stream

    vec = vec_ref[0]                                 # (6, 64) f32 small-vector slab
    bo, ln1g, ln1b = vec[0:1], vec[1:2], vec[2:3]
    ff2b, ln2g, ln2b = vec[3:4], vec[4:5], vec[5:6]

    # ---- multi-head self-attention (post-norm; 1/sqrt(d_h) pre-folded into wq/bq) ----
    qkv = jnp.dot(x.astype(bf16), wqkv_ref[0],
                  preferred_element_type=jnp.float32) + bqkv_ref[0]   # (B*S, 192) f32
    qkv3 = qkv.reshape(B, S, 3 * D_MODEL)

    attn = jnp.zeros((B * S, D_MODEL), jnp.float32)
    for h in range(NHEAD):                           # static tiny loop; batched over B
        lo = h * HEAD_DIM
        qh = qkv3[:, :, lo:lo + HEAD_DIM]
        kh = qkv3[:, :, D_MODEL + lo:D_MODEL + lo + HEAD_DIM]
        vh = qkv3[:, :, 2 * D_MODEL + lo:2 * D_MODEL + lo + HEAD_DIM]
        s = jnp.einsum("bqd,bkd->bqk", qh, kh, preferred_element_type=jnp.float32)
        m = jnp.max(s, axis=-1, keepdims=True)
        e = jnp.exp(s - m)
        p = e * pl.reciprocal(jnp.sum(e, axis=-1, keepdims=True), approx=True)
        ho = jnp.einsum("bqk,bkd->bqd", p, vh,
                        preferred_element_type=jnp.float32)           # (B, S, 16)
        # fold W_o per head: sublane-aligned 16-row slice of wo, no concat
        attn = attn + jnp.dot(ho.reshape(B * S, HEAD_DIM).astype(bf16),
                              wo_ref[0, lo:lo + HEAD_DIM, :],
                              preferred_element_type=jnp.float32)
    x = _layernorm(x + attn + bo, ln1g, ln1b)

    # ---- feed forward (Linear -> ReLU -> Linear), single pass, bf16 weights to MXU ----
    hid = jnp.maximum(jnp.dot(x.astype(bf16), ff1w_ref[0],
                              preferred_element_type=jnp.float32) + ff1b_ref[0], 0.0)
    ff = jnp.dot(hid.astype(bf16), ff2w_ref[0],
                 preferred_element_type=jnp.float32) + ff2b
    x = _layernorm(x + ff, ln2g, ln2b)
    x_scratch[...] = x

    # ---- final step: head on the last token of each sequence (strided sublane read) ----
    @pl.when(l == NUM_LAYERS - 1)
    def _():
        last = x_scratch[pl.ds(S - 1, B, stride=S), :]                # (B, 64)
        h1 = jnp.dot(last.astype(bf16), h1w_ref[...],
                     preferred_element_type=jnp.float32) + h1b_ref[...]
        h1 = jnp.maximum(h1, 0.0)
        o_ref[...] = jnp.dot(h1, h2w_ref[...],
                             preferred_element_type=jnp.float32) + h2b_ref[...]


def qqq_forward(x, params):
    B, S, F = x.shape
    x2 = x.reshape(B * S, F).astype(jnp.float32)
    pe_s = params["pe"][:S]                       # (S, d_model), broadcast over batch in-kernel

    inputs = (x2, pe_s,
              params["in_w"], params["in_b"],
              params["wqkv"], params["bqkv"], params["wo"], params["vecs"],
              params["ff1_w"], params["ff1_b"], params["ff2_w"],
              params["h1_w"], params["h1_b"], params["h2_w"], params["h2_b"])

    def const_spec(arr):        # whole array, resident across the layer grid (fetched once)
        nd = arr.ndim
        return pl.BlockSpec(arr.shape, lambda l, _n=nd: (0,) * _n)

    def layer_spec(arr):        # stacked (L, ...) -> (1, ...) slice per grid step (double-buffered)
        nd = arr.ndim
        return pl.BlockSpec((1,) + arr.shape[1:], lambda l, _n=nd: (l,) + (0,) * (_n - 1))

    in_specs = [
        const_spec(x2), const_spec(pe_s),
        const_spec(params["in_w"]), const_spec(params["in_b"]),
        layer_spec(params["wqkv"]), layer_spec(params["bqkv"]),
        layer_spec(params["wo"]), layer_spec(params["vecs"]),
        layer_spec(params["ff1_w"]), layer_spec(params["ff1_b"]),
        layer_spec(params["ff2_w"]),
        const_spec(params["h1_w"]), const_spec(params["h1_b"]),
        const_spec(params["h2_w"]), const_spec(params["h2_b"]),
    ]

    out = pl.pallas_call(
        partial(qqq_kernel, B, S),
        grid=(NUM_LAYERS,),
        in_specs=in_specs,
        out_specs=pl.BlockSpec((B, 1), lambda l: (0, 0)),
        out_shape=jax.ShapeDtypeStruct((B, 1), jnp.float32),
        scratch_shapes=[pltpu.VMEM((B * S, D_MODEL), jnp.float32)],
        compiler_params=pltpu.CompilerParams(
            dimension_semantics=("arbitrary",),          # x carried layer-to-layer in scratch
            vmem_limit_bytes=16 * 1024 * 1024),
    )(*inputs)
    return out[:, 0]                                     # matches .squeeze(-1) -> (B,)


# --------------------- deterministic parameter construction ---------------------
def _uniform(key, shape, bound):
    return jax.random.uniform(key, shape, jnp.float32, -bound, bound)


def make_params(key):
    keys = iter(jax.random.split(key, 64))
    p = {}

    # positional encoding buffer
    pos = jnp.arange(MAX_LEN, dtype=jnp.float32)[:, None]
    div = jnp.exp(jnp.arange(0, D_MODEL, 2, dtype=jnp.float32) * (-math.log(10000.0) / D_MODEL))
    pe = jnp.zeros((MAX_LEN, D_MODEL), jnp.float32)
    pe = pe.at[:, 0::2].set(jnp.sin(pos * div))
    pe = pe.at[:, 1::2].set(jnp.cos(pos * div))
    p["pe"] = pe

    # input projection Linear(feature_dim, d_model); stored pre-transposed (F, d)
    bfd = 1.0 / math.sqrt(FEATURE_DIM)
    p["in_w"] = _uniform(next(keys), (FEATURE_DIM, D_MODEL), bfd)
    p["in_b"] = _uniform(next(keys), (1, D_MODEL), bfd)

    bd = 1.0 / math.sqrt(D_MODEL)
    bff = 1.0 / math.sqrt(DIM_FF)
    scale = 1.0 / math.sqrt(HEAD_DIM)

    wqkv_l, bqkv_l, wo_l, vecs_l = [], [], [], []
    ff1w_l, ff1b_l, ff2w_l = [], [], []
    for _ in range(NUM_LAYERS):
        wq = _uniform(next(keys), (D_MODEL, D_MODEL), bd)
        bq = _uniform(next(keys), (1, D_MODEL), bd)
        wk = _uniform(next(keys), (D_MODEL, D_MODEL), bd)
        bk = _uniform(next(keys), (1, D_MODEL), bd)
        wv = _uniform(next(keys), (D_MODEL, D_MODEL), bd)
        bv = _uniform(next(keys), (1, D_MODEL), bd)
        # fused qkv weight with the attention scale folded into wq/bq
        wqkv_l.append(jnp.concatenate([wq * scale, wk, wv], axis=1).astype(jnp.bfloat16))
        bqkv_l.append(jnp.concatenate([bq * scale, bk, bv], axis=1))

        wo_l.append(_uniform(next(keys), (D_MODEL, D_MODEL), bd).astype(jnp.bfloat16))
        bo = _uniform(next(keys), (1, D_MODEL), bd)

        ff1w_l.append(_uniform(next(keys), (D_MODEL, DIM_FF), bd).astype(jnp.bfloat16))
        ff1b_l.append(_uniform(next(keys), (1, DIM_FF), bd))
        ff2w_l.append(_uniform(next(keys), (DIM_FF, D_MODEL), bff).astype(jnp.bfloat16))
        ff2b = _uniform(next(keys), (1, D_MODEL), bff)

        ln1g = jnp.ones((1, D_MODEL), jnp.float32)
        ln1b = jnp.zeros((1, D_MODEL), jnp.float32)
        ln2g = jnp.ones((1, D_MODEL), jnp.float32)
        ln2b = jnp.zeros((1, D_MODEL), jnp.float32)
        # one small f32 slab per layer: rows = [bo, ln1_g, ln1_b, ff2_b, ln2_g, ln2_b]
        vecs_l.append(jnp.concatenate([bo, ln1g, ln1b, ff2b, ln2g, ln2b], axis=0))

    p["wqkv"] = jnp.stack(wqkv_l, axis=0)     # (L, 64, 192) bf16
    p["bqkv"] = jnp.stack(bqkv_l, axis=0)     # (L, 1, 192)  f32
    p["wo"]   = jnp.stack(wo_l, axis=0)       # (L, 64, 64)  bf16
    p["vecs"] = jnp.stack(vecs_l, axis=0)     # (L, 6, 64)   f32
    p["ff1_w"] = jnp.stack(ff1w_l, axis=0)    # (L, 64, 2048) bf16
    p["ff1_b"] = jnp.stack(ff1b_l, axis=0)    # (L, 1, 2048)  f32
    p["ff2_w"] = jnp.stack(ff2w_l, axis=0)    # (L, 2048, 64) bf16

    # head: Linear(d, d/2) -> ReLU -> Linear(d/2, 1), stored pre-transposed
    p["h1_w"] = _uniform(next(keys), (D_MODEL, D_HALF), bd).astype(jnp.bfloat16)
    p["h1_b"] = _uniform(next(keys), (1, D_HALF), bd)
    bh = 1.0 / math.sqrt(D_HALF)
    p["h2_w"] = _uniform(next(keys), (D_HALF, 1), bh)
    p["h2_b"] = _uniform(next(keys), (1, 1), bh)
    return p


# ------- pure-JAX reference mirroring the kernel numerics (bf16 matmul operands, -------
# ------- f32 accumulation, exact softmax)                                         -------
def qqq_forward_ref(x, params):
    B, S, F = x.shape
    bf16 = jnp.bfloat16
    h = x.reshape(B * S, F).astype(jnp.float32) @ params["in_w"] + params["in_b"]
    h = (h.reshape(B, S, D_MODEL) + params["pe"][:S][None]).reshape(B * S, D_MODEL)
    for l in range(NUM_LAYERS):
        qkv = jnp.dot(h.astype(bf16), params["wqkv"][l],
                      preferred_element_type=jnp.float32) + params["bqkv"][l]
        qkv3 = qkv.reshape(B, S, 3 * D_MODEL)
        attn = jnp.zeros((B * S, D_MODEL), jnp.float32)
        for hd in range(NHEAD):
            lo = hd * HEAD_DIM
            qh = qkv3[:, :, lo:lo + HEAD_DIM]
            kh = qkv3[:, :, D_MODEL + lo:D_MODEL + lo + HEAD_DIM]
            vh = qkv3[:, :, 2 * D_MODEL + lo:2 * D_MODEL + lo + HEAD_DIM]
            s = jnp.einsum("bqd,bkd->bqk", qh, kh)
            pmat = jax.nn.softmax(s, axis=-1)
            ho = jnp.einsum("bqk,bkd->bqd", pmat, vh).reshape(B * S, HEAD_DIM)
            attn = attn + jnp.dot(ho.astype(bf16), params["wo"][l, lo:lo + HEAD_DIM, :],
                                  preferred_element_type=jnp.float32)
        vec = params["vecs"][l]
        bo, ln1g, ln1b = vec[0:1], vec[1:2], vec[2:3]
        ff2b, ln2g, ln2b = vec[3:4], vec[4:5], vec[5:6]
        h = _layernorm(h + attn + bo, ln1g, ln1b)
        hid = jnp.maximum(jnp.dot(h.astype(bf16), params["ff1_w"][l],
                                  preferred_element_type=jnp.float32) + params["ff1_b"][l], 0.0)
        ff = jnp.dot(hid.astype(bf16), params["ff2_w"][l],
                     preferred_element_type=jnp.float32) + ff2b
        h = _layernorm(h + ff, ln2g, ln2b)
    last = h.reshape(B, S, D_MODEL)[:, -1]
    h1 = jnp.maximum(jnp.dot(last.astype(bf16), params["h1_w"],
                             preferred_element_type=jnp.float32) + params["h1_b"], 0.0)
    o = jnp.dot(h1, params["h2_w"], preferred_element_type=jnp.float32) + params["h2_b"]
    return o[:, 0]


if __name__ == "__main__":
    key = jax.random.PRNGKey(0)
    kx, kp = jax.random.split(key)
    B, S = 2, 8
    x = jax.random.normal(kx, (B, S, FEATURE_DIM), jnp.float32)
    params = make_params(kp)

    y = jax.block_until_ready(qqq_forward(x, params))
    y_ref = jax.block_until_ready(qqq_forward_ref(x, params))

    assert y.shape == (B,)
    np.testing.assert_allclose(np.asarray(y), np.asarray(y_ref), rtol=2e-3, atol=2e-3)
    print("KERNEL_OK")
</pallas_src>

<mosaic_0001>
module attributes {stable_mosaic.version = 11 : i64} {
  func.func @qqq_kernel(%arg0: i32, %arg1: memref<16x16xf32, #tpu.memory_space<vmem>>, %arg2: memref<8x64xf32, #tpu.memory_space<vmem>>, %arg3: memref<16x64xf32, #tpu.memory_space<vmem>>, %arg4: memref<1x64xf32, #tpu.memory_space<vmem>>, %arg5: memref<1x64x192xbf16, #tpu.memory_space<vmem>>, %arg6: memref<1x1x192xf32, #tpu.memory_space<vmem>>, %arg7: memref<1x64x64xbf16, #tpu.memory_space<vmem>>, %arg8: memref<1x6x64xf32, #tpu.memory_space<vmem>>, %arg9: memref<1x64x2048xbf16, #tpu.memory_space<vmem>>, %arg10: memref<1x1x2048xf32, #tpu.memory_space<vmem>>, %arg11: memref<1x2048x64xbf16, #tpu.memory_space<vmem>>, %arg12: memref<64x32xbf16, #tpu.memory_space<vmem>>, %arg13: memref<1x32xf32, #tpu.memory_space<vmem>>, %arg14: memref<32x1xf32, #tpu.memory_space<vmem>>, %arg15: memref<1x1xf32, #tpu.memory_space<vmem>>, %arg16: memref<2x1xf32, #tpu.memory_space<vmem>>, %arg17: memref<16x64xf32, #tpu.memory_space<vmem>>) attributes {dimension_semantics = [#tpu.dimension_semantics<arbitrary>], iteration_bounds = array<i64: 2>, scalar_prefetch = 0 : i64, scratch_operands = 1 : i64, tpu.core_type = #tpu.core_type<tc>, window_params = [{pipeline_mode = #tpu.pipeline_mode<synchronous>, transform_indices = @transform_0, window_bounds = array<i64: 16, 16>}, {pipeline_mode = #tpu.pipeline_mode<synchronous>, transform_indices = @transform_1, window_bounds = array<i64: 8, 64>}, {pipeline_mode = #tpu.pipeline_mode<synchronous>, transform_indices = @transform_2, window_bounds = array<i64: 16, 64>}, {pipeline_mode = #tpu.pipeline_mode<synchronous>, transform_indices = @transform_3, window_bounds = array<i64: 1, 64>}, {transform_indices = @transform_4, window_bounds = array<i64: 1, 64, 192>}, {transform_indices = @transform_5, window_bounds = array<i64: 1, 1, 192>}, {transform_indices = @transform_6, window_bounds = array<i64: 1, 64, 64>}, {transform_indices = @transform_7, window_bounds = array<i64: 1, 6, 64>}, {transform_indices = @transform_8, window_bounds = array<i64: 1, 64, 2048>}, {transform_indices = @transform_9, window_bounds = array<i64: 1, 1, 2048>}, {transform_indices = @transform_10, window_bounds = array<i64: 1, 2048, 64>}, {pipeline_mode = #tpu.pipeline_mode<synchronous>, transform_indices = @transform_11, window_bounds = array<i64: 64, 32>}, {pipeline_mode = #tpu.pipeline_mode<synchronous>, transform_indices = @transform_12, window_bounds = array<i64: 1, 32>}, {pipeline_mode = #tpu.pipeline_mode<synchronous>, transform_indices = @transform_13, window_bounds = array<i64: 32, 1>}, {pipeline_mode = #tpu.pipeline_mode<synchronous>, transform_indices = @transform_14, window_bounds = array<i64: 1, 1>}, {pipeline_mode = #tpu.pipeline_mode<synchronous>, transform_indices = @transform_15, window_bounds = array<i64: 2, 1>}]} {
    %c0_i32 = arith.constant 0 : i32
    %0 = arith.cmpi eq, %arg0, %c0_i32 : i32
    %1 = arith.extui %0 : i1 to i32
    %c0_i32_0 = arith.constant 0 : i32
    %2 = arith.cmpi ne, %1, %c0_i32_0 : i32
    scf.if %2 {
      %c0_66 = arith.constant 0 : index
      %c0_67 = arith.constant 0 : index
      %170 = vector.load %arg1[%c0_66, %c0_67] : memref<16x16xf32, #tpu.memory_space<vmem>>, vector<16x16xf32>
      %c0_68 = arith.constant 0 : index
      %c0_69 = arith.constant 0 : index
      %171 = vector.load %arg3[%c0_68, %c0_69] : memref<16x64xf32, #tpu.memory_space<vmem>>, vector<16x64xf32>
      %cst_70 = arith.constant dense<0.000000e+00> : vector<16x64xf32>
      %172 = tpu.matmul %170, %171, %cst_70 {dimension_numbers = #tpu.dot_dimension_numbers<[1], [0], [0], [1], [0, 0, 1, 1], [], []>} : vector<16x16xf32>, vector<16x64xf32>, vector<16x64xf32> -> vector<16x64xf32>
      %c0_71 = arith.constant 0 : index
      %c0_72 = arith.constant 0 : index
      %173 = vector.load %arg4[%c0_71, %c0_72] : memref<1x64xf32, #tpu.memory_space<vmem>>, vector<1x64xf32>
      %174 = vector.broadcast %173 : vector<1x64xf32> to vector<16x64xf32>
      %175 = arith.addf %172, %174 : vector<16x64xf32>
      %176 = vector.shape_cast %175 : vector<16x64xf32> to vector<2x8x64xf32>
      %c0_73 = arith.constant 0 : index
      %c0_74 = arith.constant 0 : index
      %177 = vector.load %arg2[%c0_73, %c0_74] : memref<8x64xf32, #tpu.memory_space<vmem>>, vector<8x64xf32>
      %178 = vector.shape_cast %177 : vector<8x64xf32> to vector<1x8x64xf32>
      %179 = vector.broadcast %178 : vector<1x8x64xf32> to vector<2x8x64xf32>
      %180 = arith.addf %176, %179 : vector<2x8x64xf32>
      %181 = vector.shape_cast %180 : vector<2x8x64xf32> to vector<16x64xf32>
      %c0_75 = arith.constant 0 : index
      %c0_76 = arith.constant 0 : index
      %182 = vector.load %arg17[%c0_75, %c0_76] : memref<16x64xf32, #tpu.memory_space<vmem>>, vector<16x64xf32>
      tpu.vector_store %arg17[%c0_75, %c0_76], %181 {strides = array<i32>} : memref<16x64xf32, #tpu.memory_space<vmem>>, vector<16x64xf32>,
    } else {
    }
    %c0 = arith.constant 0 : index
    %c0_1 = arith.constant 0 : index
    %3 = vector.load %arg17[%c0, %c0_1] : memref<16x64xf32, #tpu.memory_space<vmem>>, vector<16x64xf32>
    %c0_2 = arith.constant 0 : index
    %c0_3 = arith.constant 0 : index
    %c0_4 = arith.constant 0 : index
    %4 = vector.load %arg8[%c0_2, %c0_3, %c0_4] : memref<1x6x64xf32, #tpu.memory_space<vmem>>, vector<1x6x64xf32>
    %5 = vector.shape_cast %4 : vector<1x6x64xf32> to vector<6x64xf32>
    %6 = vector.extract_strided_slice %5 {offsets = [0, 0], sizes = [1, 64], strides = [1, 1]} : vector<6x64xf32> to vector<1x64xf32>
    %7 = vector.extract_strided_slice %5 {offsets = [1, 0], sizes = [1, 64], strides = [1, 1]} : vector<6x64xf32> to vector<1x64xf32>
    %8 = vector.extract_strided_slice %5 {offsets = [2, 0], sizes = [1, 64], strides = [1, 1]} : vector<6x64xf32> to vector<1x64xf32>
    %9 = vector.extract_strided_slice %5 {offsets = [3, 0], sizes = [1, 64], strides = [1, 1]} : vector<6x64xf32> to vector<1x64xf32>
    %10 = vector.extract_strided_slice %5 {offsets = [4, 0], sizes = [1, 64], strides = [1, 1]} : vector<6x64xf32> to vector<1x64xf32>
    %11 = vector.extract_strided_slice %5 {offsets = [5, 0], sizes = [1, 64], strides = [1, 1]} : vector<6x64xf32> to vector<1x64xf32>
    %12 = arith.truncf %3 : vector<16x64xf32> to vector<16x64xbf16>
    %c0_5 = arith.constant 0 : index
    %c0_6 = arith.constant 0 : index
    %c0_7 = arith.constant 0 : index
    %13 = vector.load %arg5[%c0_5, %c0_6, %c0_7] : memref<1x64x192xbf16, #tpu.memory_space<vmem>>, vector<1x64x192xbf16>
    %14 = vector.shape_cast %13 : vector<1x64x192xbf16> to vector<64x192xbf16>
    %cst = arith.constant dense<0.000000e+00> : vector<16x192xf32>
    %15 = tpu.matmul %12, %14, %cst {dimension_numbers = #tpu.dot_dimension_numbers<[1], [0], [0], [1], [0, 0, 1, 1], [], []>} : vector<16x64xbf16>, vector<64x192xbf16>, vector<16x192xf32> -> vector<16x192xf32>
    %c0_8 = arith.constant 0 : index
    %c0_9 = arith.constant 0 : index
    %c0_10 = arith.constant 0 : index
    %16 = vector.load %arg6[%c0_8, %c0_9, %c0_10] : memref<1x1x192xf32, #tpu.memory_space<vmem>>, vector<1x1x192xf32>
    %17 = vector.shape_cast %16 : vector<1x1x192xf32> to vector<1x192xf32>
    %18 = vector.broadcast %17 : vector<1x192xf32> to vector<16x192xf32>
    %19 = arith.addf %15, %18 : vector<16x192xf32>
    %20 = vector.shape_cast %19 : vector<16x192xf32> to vector<2x8x192xf32>
    %cst_11 = arith.constant 0.000000e+00 : f32
    %21 = vector.broadcast %cst_11 : f32 to vector<16x64xf32>
    %22 = vector.extract_strided_slice %20 {offsets = [0, 0, 0], sizes = [2, 8, 16], strides = [1, 1, 1]} : vector<2x8x192xf32> to vector<2x8x16xf32>
    %23 = vector.extract_strided_slice %20 {offsets = [0, 0, 64], sizes = [2, 8, 16], strides = [1, 1, 1]} : vector<2x8x192xf32> to vector<2x8x16xf32>
    %24 = vector.extract_strided_slice %20 {offsets = [0, 0, 128], sizes = [2, 8, 16], strides = [1, 1, 1]} : vector<2x8x192xf32> to vector<2x8x16xf32>
    "tpu.trace_start"() <{level = 10 : i32, message = "bqd,bkd->bqk"}> : () -> ()
    %cst_12 = arith.constant dense<0.000000e+00> : vector<2x8x8xf32>
    %25 = tpu.matmul %22, %23, %cst_12 {dimension_numbers = #tpu.dot_dimension_numbers<[2], [2], [1], [1], [0, 0, 0, 1, 1, 1], [0], [0]>} : vector<2x8x16xf32>, vector<2x8x16xf32>, vector<2x8x8xf32> -> vector<2x8x8xf32>
    "tpu.trace_stop"() : () -> ()
    %cst_13 = arith.constant dense<0xFF800000> : vector<2x8xf32>
    %26 = vector.multi_reduction <maximumf>, %25, %cst_13 [2] : vector<2x8x8xf32> to vector<2x8xf32>
    %27 = vector.shape_cast %26 : vector<2x8xf32> to vector<2x8x1xf32>
    %28 = vector.broadcast %27 : vector<2x8x1xf32> to vector<2x8x8xf32>
    %29 = arith.subf %25, %28 : vector<2x8x8xf32>
    %30 = math.exp %29 : vector<2x8x8xf32>
    %cst_14 = arith.constant dense<0.000000e+00> : vector<2x8xf32>
    %31 = vector.multi_reduction <add>, %30, %cst_14 [2] : vector<2x8x8xf32> to vector<2x8xf32>
    %32 = vector.shape_cast %31 : vector<2x8xf32> to vector<2x8x1xf32>
    %33 = tpu.reciprocal %32 {approx = true} : vector<2x8x1xf32> -> vector<2x8x1xf32>
    %34 = vector.broadcast %33 : vector<2x8x1xf32> to vector<2x8x8xf32>
    %35 = arith.mulf %30, %34 : vector<2x8x8xf32>
    "tpu.trace_start"() <{level = 10 : i32, message = "bqk,bkd->bqd"}> : () -> ()
    %cst_15 = arith.constant dense<0.000000e+00> : vector<2x8x16xf32>
    %36 = tpu.matmul %35, %24, %cst_15 {dimension_numbers = #tpu.dot_dimension_numbers<[2], [1], [1], [2], [0, 0, 0, 1, 1, 2], [0], [0]>} : vector<2x8x8xf32>, vector<2x8x16xf32>, vector<2x8x16xf32> -> vector<2x8x16xf32>
    "tpu.trace_stop"() : () -> ()
    %37 = vector.shape_cast %36 : vector<2x8x16xf32> to vector<16x16xf32>
    %38 = arith.truncf %37 : vector<16x16xf32> to vector<16x16xbf16>
    %c0_16 = arith.constant 0 : index
    %c0_17 = arith.constant 0 : index
    %c0_18 = arith.constant 0 : index
    %39 = vector.load %arg7[%c0_16, %c0_17, %c0_18] : memref<1x64x64xbf16, #tpu.memory_space<vmem>>, vector<1x16x64xbf16>
    %40 = vector.shape_cast %39 : vector<1x16x64xbf16> to vector<16x64xbf16>
    %cst_19 = arith.constant dense<0.000000e+00> : vector<16x64xf32>
    %41 = tpu.matmul %38, %40, %cst_19 {dimension_numbers = #tpu.dot_dimension_numbers<[1], [0], [0], [1], [0, 0, 1, 1], [], []>} : vector<16x16xbf16>, vector<16x64xbf16>, vector<16x64xf32> -> vector<16x64xf32>
    %42 = arith.addf %21, %41 : vector<16x64xf32>
    %43 = vector.extract_strided_slice %20 {offsets = [0, 0, 16], sizes = [2, 8, 16], strides = [1, 1, 1]} : vector<2x8x192xf32> to vector<2x8x16xf32>
    %44 = vector.extract_strided_slice %20 {offsets = [0, 0, 80], sizes = [2, 8, 16], strides = [1, 1, 1]} : vector<2x8x192xf32> to vector<2x8x16xf32>
    %45 = vector.extract_strided_slice %20 {offsets = [0, 0, 144], sizes = [2, 8, 16], strides = [1, 1, 1]} : vector<2x8x192xf32> to vector<2x8x16xf32>
    "tpu.trace_start"() <{level = 10 : i32, message = "bqd,bkd->bqk"}> : () -> ()
    %cst_20 = arith.constant dense<0.000000e+00> : vector<2x8x8xf32>
    %46 = tpu.matmul %43, %44, %cst_20 {dimension_numbers = #tpu.dot_dimension_numbers<[2], [2], [1], [1], [0, 0, 0, 1, 1, 1], [0], [0]>} : vector<2x8x16xf32>, vector<2x8x16xf32>, vector<2x8x8xf32> -> vector<2x8x8xf32>
    "tpu.trace_stop"() : () -> ()
    %cst_21 = arith.constant dense<0xFF800000> : vector<2x8xf32>
    %47 = vector.multi_reduction <maximumf>, %46, %cst_21 [2] : vector<2x8x8xf32> to vector<2x8xf32>
    %48 = vector.shape_cast %47 : vector<2x8xf32> to vector<2x8x1xf32>
    %49 = vector.broadcast %48 : vector<2x8x1xf32> to vector<2x8x8xf32>
    %50 = arith.subf %46, %49 : vector<2x8x8xf32>
    %51 = math.exp %50 : vector<2x8x8xf32>
    %cst_22 = arith.constant dense<0.000000e+00> : vector<2x8xf32>
    %52 = vector.multi_reduction <add>, %51, %cst_22 [2] : vector<2x8x8xf32> to vector<2x8xf32>
    %53 = vector.shape_cast %52 : vector<2x8xf32> to vector<2x8x1xf32>
    %54 = tpu.reciprocal %53 {approx = true} : vector<2x8x1xf32> -> vector<2x8x1xf32>
    %55 = vector.broadcast %54 : vector<2x8x1xf32> to vector<2x8x8xf32>
    %56 = arith.mulf %51, %55 : vector<2x8x8xf32>
    "tpu.trace_start"() <{level = 10 : i32, message = "bqk,bkd->bqd"}> : () -> ()
    %cst_23 = arith.constant dense<0.000000e+00> : vector<2x8x16xf32>
    %57 = tpu.matmul %56, %45, %cst_23 {dimension_numbers = #tpu.dot_dimension_numbers<[2], [1], [1], [2], [0, 0, 0, 1, 1, 2], [0], [0]>} : vector<2x8x8xf32>, vector<2x8x16xf32>, vector<2x8x16xf32> -> vector<2x8x16xf32>
    "tpu.trace_stop"() : () -> ()
    %58 = vector.shape_cast %57 : vector<2x8x16xf32> to vector<16x16xf32>
    %59 = arith.truncf %58 : vector<16x16xf32> to vector<16x16xbf16>
    %c0_24 = arith.constant 0 : index
    %c16 = arith.constant 16 : index
    %c0_25 = arith.constant 0 : index
    %60 = vector.load %arg7[%c0_24, %c16, %c0_25] : memref<1x64x64xbf16, #tpu.memory_space<vmem>>, vector<1x16x64xbf16>
    %61 = vector.shape_cast %60 : vector<1x16x64xbf16> to vector<16x64xbf16>
    %cst_26 = arith.constant dense<0.000000e+00> : vector<16x64xf32>
    %62 = tpu.matmul %59, %61, %cst_26 {dimension_numbers = #tpu.dot_dimension_numbers<[1], [0], [0], [1], [0, 0, 1, 1], [], []>} : vector<16x16xbf16>, vector<16x64xbf16>, vector<16x64xf32> -> vector<16x64xf32>
    %63 = arith.addf %42, %62 : vector<16x64xf32>
    %64 = vector.extract_strided_slice %20 {offsets = [0, 0, 32], sizes = [2, 8, 16], strides = [1, 1, 1]} : vector<2x8x192xf32> to vector<2x8x16xf32>
    %65 = vector.extract_strided_slice %20 {offsets = [0, 0, 96], sizes = [2, 8, 16], strides = [1, 1, 1]} : vector<2x8x192xf32> to vector<2x8x16xf32>
    %66 = vector.extract_strided_slice %20 {offsets = [0, 0, 160], sizes = [2, 8, 16], strides = [1, 1, 1]} : vector<2x8x192xf32> to vector<2x8x16xf32>
    "tpu.trace_start"() <{level = 10 : i32, message = "bqd,bkd->bqk"}> : () -> ()
    %cst_27 = arith.constant dense<0.000000e+00> : vector<2x8x8xf32>
    %67 = tpu.matmul %64, %65, %cst_27 {dimension_numbers = #tpu.dot_dimension_numbers<[2], [2], [1], [1], [0, 0, 0, 1, 1, 1], [0], [0]>} : vector<2x8x16xf32>, vector<2x8x16xf32>, vector<2x8x8xf32> -> vector<2x8x8xf32>
    "tpu.trace_stop"() : () -> ()
    %cst_28 = arith.constant dense<0xFF800000> : vector<2x8xf32>
    %68 = vector.multi_reduction <maximumf>, %67, %cst_28 [2] : vector<2x8x8xf32> to vector<2x8xf32>
    %69 = vector.shape_cast %68 : vector<2x8xf32> to vector<2x8x1xf32>
    %70 = vector.broadcast %69 : vector<2x8x1xf32> to vector<2x8x8xf32>
    %71 = arith.subf %67, %70 : vector<2x8x8xf32>
    %72 = math.exp %71 : vector<2x8x8xf32>
    %cst_29 = arith.constant dense<0.000000e+00> : vector<2x8xf32>
    %73 = vector.multi_reduction <add>, %72, %cst_29 [2] : vector<2x8x8xf32> to vector<2x8xf32>
    %74 = vector.shape_cast %73 : vector<2x8xf32> to vector<2x8x1xf32>
    %75 = tpu.reciprocal %74 {approx = true} : vector<2x8x1xf32> -> vector<2x8x1xf32>
    %76 = vector.broadcast %75 : vector<2x8x1xf32> to vector<2x8x8xf32>
    %77 = arith.mulf %72, %76 : vector<2x8x8xf32>
    "tpu.trace_start"() <{level = 10 : i32, message = "bqk,bkd->bqd"}> : () -> ()
    %cst_30 = arith.constant dense<0.000000e+00> : vector<2x8x16xf32>
    %78 = tpu.matmul %77, %66, %cst_30 {dimension_numbers = #tpu.dot_dimension_numbers<[2], [1], [1], [2], [0, 0, 0, 1, 1, 2], [0], [0]>} : vector<2x8x8xf32>, vector<2x8x16xf32>, vector<2x8x16xf32> -> vector<2x8x16xf32>
    "tpu.trace_stop"() : () -> ()
    %79 = vector.shape_cast %78 : vector<2x8x16xf32> to vector<16x16xf32>
    %80 = arith.truncf %79 : vector<16x16xf32> to vector<16x16xbf16>
    %c0_31 = arith.constant 0 : index
    %c32 = arith.constant 32 : index
    %c0_32 = arith.constant 0 : index
    %81 = vector.load %arg7[%c0_31, %c32, %c0_32] : memref<1x64x64xbf16, #tpu.memory_space<vmem>>, vector<1x16x64xbf16>
    %82 = vector.shape_cast %81 : vector<1x16x64xbf16> to vector<16x64xbf16>
    %cst_33 = arith.constant dense<0.000000e+00> : vector<16x64xf32>
    %83 = tpu.matmul %80, %82, %cst_33 {dimension_numbers = #tpu.dot_dimension_numbers<[1], [0], [0], [1], [0, 0, 1, 1], [], []>} : vector<16x16xbf16>, vector<16x64xbf16>, vector<16x64xf32> -> vector<16x64xf32>
    %84 = arith.addf %63, %83 : vector<16x64xf32>
    %85 = vector.extract_strided_slice %20 {offsets = [0, 0, 48], sizes = [2, 8, 16], strides = [1, 1, 1]} : vector<2x8x192xf32> to vector<2x8x16xf32>
    %86 = vector.extract_strided_slice %20 {offsets = [0, 0, 112], sizes = [2, 8, 16], strides = [1, 1, 1]} : vector<2x8x192xf32> to vector<2x8x16xf32>
    %87 = vector.extract_strided_slice %20 {offsets = [0, 0, 176], sizes = [2, 8, 16], strides = [1, 1, 1]} : vector<2x8x192xf32> to vector<2x8x16xf32>
    "tpu.trace_start"() <{level = 10 : i32, message = "bqd,bkd->bqk"}> : () -> ()
    %cst_34 = arith.constant dense<0.000000e+00> : vector<2x8x8xf32>
    %88 = tpu.matmul %85, %86, %cst_34 {dimension_numbers = #tpu.dot_dimension_numbers<[2], [2], [1], [1], [0, 0, 0, 1, 1, 1], [0], [0]>} : vector<2x8x16xf32>, vector<2x8x16xf32>, vector<2x8x8xf32> -> vector<2x8x8xf32>
    "tpu.trace_stop"() : () -> ()
    %cst_35 = arith.constant dense<0xFF800000> : vector<2x8xf32>
    %89 = vector.multi_reduction <maximumf>, %88, %cst_35 [2] : vector<2x8x8xf32> to vector<2x8xf32>
    %90 = vector.shape_cast %89 : vector<2x8xf32> to vector<2x8x1xf32>
    %91 = vector.broadcast %90 : vector<2x8x1xf32> to vector<2x8x8xf32>
    %92 = arith.subf %88, %91 : vector<2x8x8xf32>
    %93 = math.exp %92 : vector<2x8x8xf32>
    %cst_36 = arith.constant dense<0.000000e+00> : vector<2x8xf32>
    %94 = vector.multi_reduction <add>, %93, %cst_36 [2] : vector<2x8x8xf32> to vector<2x8xf32>
    %95 = vector.shape_cast %94 : vector<2x8xf32> to vector<2x8x1xf32>
    %96 = tpu.reciprocal %95 {approx = true} : vector<2x8x1xf32> -> vector<2x8x1xf32>
    %97 = vector.broadcast %96 : vector<2x8x1xf32> to vector<2x8x8xf32>
    %98 = arith.mulf %93, %97 : vector<2x8x8xf32>
    "tpu.trace_start"() <{level = 10 : i32, message = "bqk,bkd->bqd"}> : () -> ()
    %cst_37 = arith.constant dense<0.000000e+00> : vector<2x8x16xf32>
    %99 = tpu.matmul %98, %87, %cst_37 {dimension_numbers = #tpu.dot_dimension_numbers<[2], [1], [1], [2], [0, 0, 0, 1, 1, 2], [0], [0]>} : vector<2x8x8xf32>, vector<2x8x16xf32>, vector<2x8x16xf32> -> vector<2x8x16xf32>
    "tpu.trace_stop"() : () -> ()
    %100 = vector.shape_cast %99 : vector<2x8x16xf32> to vector<16x16xf32>
    %101 = arith.truncf %100 : vector<16x16xf32> to vector<16x16xbf16>
    %c0_38 = arith.constant 0 : index
    %c48 = arith.constant 48 : index
    %c0_39 = arith.constant 0 : index
    %102 = vector.load %arg7[%c0_38, %c48, %c0_39] : memref<1x64x64xbf16, #tpu.memory_space<vmem>>, vector<1x16x64xbf16>
    %103 = vector.shape_cast %102 : vector<1x16x64xbf16> to vector<16x64xbf16>
    %cst_40 = arith.constant dense<0.000000e+00> : vector<16x64xf32>
    %104 = tpu.matmul %101, %103, %cst_40 {dimension_numbers = #tpu.dot_dimension_numbers<[1], [0], [0], [1], [0, 0, 1, 1], [], []>} : vector<16x16xbf16>, vector<16x64xbf16>, vector<16x64xf32> -> vector<16x64xf32>
    %105 = arith.addf %84, %104 : vector<16x64xf32>
    %106 = arith.addf %3, %105 : vector<16x64xf32>
    %107 = vector.broadcast %6 : vector<1x64xf32> to vector<16x64xf32>
    %108 = arith.addf %106, %107 : vector<16x64xf32>
    %cst_41 = arith.constant dense<0.000000e+00> : vector<16xf32>
    %109 = vector.multi_reduction <add>, %108, %cst_41 [1] : vector<16x64xf32> to vector<16xf32>
    %110 = vector.shape_cast %109 : vector<16xf32> to vector<16x1xf32>
    %cst_42 = arith.constant 6.400000e+01 : f32
    %111 = vector.broadcast %cst_42 : f32 to vector<16x1xf32>
    %112 = arith.divf %110, %111 : vector<16x1xf32>
    %113 = vector.broadcast %112 : vector<16x1xf32> to vector<16x64xf32>
    %114 = arith.subf %108, %113 : vector<16x64xf32>
    %115 = arith.mulf %114, %114 : vector<16x64xf32>
    %cst_43 = arith.constant dense<0.000000e+00> : vector<16xf32>
    %116 = vector.multi_reduction <add>, %115, %cst_43 [1] : vector<16x64xf32> to vector<16xf32>
    %117 = vector.shape_cast %116 : vector<16xf32> to vector<16x1xf32>
    %cst_44 = arith.constant 6.400000e+01 : f32
    %118 = vector.broadcast %cst_44 : f32 to vector<16x1xf32>
    %119 = arith.divf %117, %118 : vector<16x1xf32>
    %cst_45 = arith.constant 9.99999974E-6 : f32
    %120 = vector.broadcast %cst_45 : f32 to vector<16x1xf32>
    %121 = arith.addf %119, %120 : vector<16x1xf32>
    %122 = math.rsqrt %121 : vector<16x1xf32>
    %123 = vector.broadcast %122 : vector<16x1xf32> to vector<16x64xf32>
    %124 = arith.mulf %114, %123 : vector<16x64xf32>
    %125 = vector.broadcast %7 : vector<1x64xf32> to vector<16x64xf32>
    %126 = arith.mulf %124, %125 : vector<16x64xf32>
    %127 = vector.broadcast %8 : vector<1x64xf32> to vector<16x64xf32>
    %128 = arith.addf %126, %127 : vector<16x64xf32>
    %129 = arith.truncf %128 : vector<16x64xf32> to vector<16x64xbf16>
    %c0_46 = arith.constant 0 : index
    %c0_47 = arith.constant 0 : index
    %c0_48 = arith.constant 0 : index
    %130 = vector.load %arg9[%c0_46, %c0_47, %c0_48] : memref<1x64x2048xbf16, #tpu.memory_space<vmem>>, vector<1x64x2048xbf16>
    %131 = vector.shape_cast %130 : vector<1x64x2048xbf16> to vector<64x2048xbf16>
    %cst_49 = arith.constant dense<0.000000e+00> : vector<16x2048xf32>
    %132 = tpu.matmul %129, %131, %cst_49 {dimension_numbers = #tpu.dot_dimension_numbers<[1], [0], [0], [1], [0, 0, 1, 1], [], []>} : vector<16x64xbf16>, vector<64x2048xbf16>, vector<16x2048xf32> -> vector<16x2048xf32>
    %c0_50 = arith.constant 0 : index
    %c0_51 = arith.constant 0 : index
    %c0_52 = arith.constant 0 : index
    %133 = vector.load %arg10[%c0_50, %c0_51, %c0_52] : memref<1x1x2048xf32, #tpu.memory_space<vmem>>, vector<1x1x2048xf32>
    %134 = vector.shape_cast %133 : vector<1x1x2048xf32> to vector<1x2048xf32>
    %135 = vector.broadcast %134 : vector<1x2048xf32> to vector<16x2048xf32>
    %136 = arith.addf %132, %135 : vector<16x2048xf32>
    %cst_53 = arith.constant 0.000000e+00 : f32
    %137 = vector.broadcast %cst_53 : f32 to vector<16x2048xf32>
    %138 = arith.maximumf %136, %137 : vector<16x2048xf32>
    %139 = arith.truncf %138 : vector<16x2048xf32> to vector<16x2048xbf16>
    %c0_54 = arith.constant 0 : index
    %c0_55 = arith.constant 0 : index
    %c0_56 = arith.constant 0 : index
    %140 = vector.load %arg11[%c0_54, %c0_55, %c0_56] : memref<1x2048x64xbf16, #tpu.memory_space<vmem>>, vector<1x2048x64xbf16>
    %141 = vector.shape_cast %140 : vector<1x2048x64xbf16> to vector<2048x64xbf16>
    %cst_57 = arith.constant dense<0.000000e+00> : vector<16x64xf32>
    %142 = tpu.matmul %139, %141, %cst_57 {dimension_numbers = #tpu.dot_dimension_numbers<[1], [0], [0], [1], [0, 0, 1, 1], [], []>} : vector<16x2048xbf16>, vector<2048x64xbf16>, vector<16x64xf32> -> vector<16x64xf32>
    %143 = vector.broadcast %9 : vector<1x64xf32> to vector<16x64xf32>
    %144 = arith.addf %142, %143 : vector<16x64xf32>
    %145 = arith.addf %128, %144 : vector<16x64xf32>
    %cst_58 = arith.constant dense<0.000000e+00> : vector<16xf32>
    %146 = vector.multi_reduction <add>, %145, %cst_58 [1] : vector<16x64xf32> to vector<16xf32>
    %147 = vector.shape_cast %146 : vector<16xf32> to vector<16x1xf32>
    %cst_59 = arith.constant 6.400000e+01 : f32
    %148 = vector.broadcast %cst_59 : f32 to vector<16x1xf32>
    %149 = arith.divf %147, %148 : vector<16x1xf32>
    %150 = vector.broadcast %149 : vector<16x1xf32> to vector<16x64xf32>
    %151 = arith.subf %145, %150 : vector<16x64xf32>
    %152 = arith.mulf %151, %151 : vector<16x64xf32>
    %cst_60 = arith.constant dense<0.000000e+00> : vector<16xf32>
    %153 = vector.multi_reduction <add>, %152, %cst_60 [1] : vector<16x64xf32> to vector<16xf32>
    %154 = vector.shape_cast %153 : vector<16xf32> to vector<16x1xf32>
    %cst_61 = arith.constant 6.400000e+01 : f32
    %155 = vector.broadcast %cst_61 : f32 to vector<16x1xf32>
    %156 = arith.divf %154, %155 : vector<16x1xf32>
    %cst_62 = arith.constant 9.99999974E-6 : f32
    %157 = vector.broadcast %cst_62 : f32 to vector<16x1xf32>
    %158 = arith.addf %156, %157 : vector<16x1xf32>
    %159 = math.rsqrt %158 : vector<16x1xf32>
    %160 = vector.broadcast %159 : vector<16x1xf32> to vector<16x64xf32>
    %161 = arith.mulf %151, %160 : vector<16x64xf32>
    %162 = vector.broadcast %10 : vector<1x64xf32> to vector<16x64xf32>
    %163 = arith.mulf %161, %162 : vector<16x64xf32>
    %164 = vector.broadcast %11 : vector<1x64xf32> to vector<16x64xf32>
    %165 = arith.addf %163, %164 : vector<16x64xf32>
    %c0_63 = arith.constant 0 : index
    %c0_64 = arith.constant 0 : index
    %166 = vector.load %arg17[%c0_63, %c0_64] : memref<16x64xf32, #tpu.memory_space<vmem>>, vector<16x64xf32>
    tpu.vector_store %arg17[%c0_63, %c0_64], %165 {strides = array<i32>} : memref<16x64xf32, #tpu.memory_space<vmem>>, vector<16x64xf32>,
    %c1_i32 = arith.constant 1 : i32
    %167 = arith.cmpi eq, %arg0, %c1_i32 : i32
    %168 = arith.extui %167 : i1 to i32
    %c0_i32_65 = arith.constant 0 : i32
    %169 = arith.cmpi ne, %168, %c0_i32_65 : i32
    scf.if %169 {
      %c7 = arith.constant 7 : index
      %c0_66 = arith.constant 0 : index
      %170 = tpu.strided_load %arg17[%c7, %c0_66] {strides = array<i32: 8, 1>} : memref<16x64xf32, #tpu.memory_space<vmem>>, vector<2x64xf32>
      %171 = arith.truncf %170 : vector<2x64xf32> to vector<2x64xbf16>
      %c0_67 = arith.constant 0 : index
      %c0_68 = arith.constant 0 : index
      %172 = vector.load %arg12[%c0_67, %c0_68] : memref<64x32xbf16, #tpu.memory_space<vmem>>, vector<64x32xbf16>
      %cst_69 = arith.constant dense<0.000000e+00> : vector<2x32xf32>
      %173 = tpu.matmul %171, %172, %cst_69 {dimension_numbers = #tpu.dot_dimension_numbers<[1], [0], [0], [1], [0, 0, 1, 1], [], []>} : vector<2x64xbf16>, vector<64x32xbf16>, vector<2x32xf32> -> vector<2x32xf32>
      %c0_70 = arith.constant 0 : index
      %c0_71 = arith.constant 0 : index
      %174 = vector.load %arg13[%c0_70, %c0_71] : memref<1x32xf32, #tpu.memory_space<vmem>>, vector<1x32xf32>
      %175 = vector.broadcast %174 : vector<1x32xf32> to vector<2x32xf32>
      %176 = arith.addf %173, %175 : vector<2x32xf32>
      %cst_72 = arith.constant 0.000000e+00 : f32
      %177 = vector.broadcast %cst_72 : f32 to vector<2x32xf32>
      %178 = arith.maximumf %176, %177 : vector<2x32xf32>
      %c0_73 = arith.constant 0 : index
      %c0_74 = arith.constant 0 : index
      %179 = vector.load %arg14[%c0_73, %c0_74] : memref<32x1xf32, #tpu.memory_space<vmem>>, vector<32x1xf32>
      %cst_75 = arith.constant dense<0.000000e+00> : vector<2x1xf32>
      %180 = tpu.matmul %178, %179, %cst_75 {dimension_numbers = #tpu.dot_dimension_numbers<[1], [0], [0], [1], [0, 0, 1, 1], [], []>} : vector<2x32xf32>, vector<32x1xf32>, vector<2x1xf32> -> vector<2x1xf32>
      %c0_76 = arith.constant 0 : index
      %c0_77 = arith.constant 0 : index
      %181 = vector.load %arg15[%c0_76, %c0_77] : memref<1x1xf32, #tpu.memory_space<vmem>>, vector<1x1xf32>
      %182 = vector.broadcast %181 : vector<1x1xf32> to vector<2x1xf32>
      %183 = arith.addf %180, %182 : vector<2x1xf32>
      %c0_78 = arith.constant 0 : index
      %c0_79 = arith.constant 0 : index
      %184 = vector.load %arg16[%c0_78, %c0_79] : memref<2x1xf32, #tpu.memory_space<vmem>>, vector<2x1xf32>
      tpu.vector_store %arg16[%c0_78, %c0_79], %183 {strides = array<i32>} : memref<2x1xf32, #tpu.memory_space<vmem>>, vector<2x1xf32>,
    } else {
    }
    return
  }
  func.func @transform_0(%arg0: i32) -> (i32, i32) {
    %c0_i32 = arith.constant 0 : i32
    %c0_i32_0 = arith.constant 0 : i32
    %c0_i32_1 = arith.constant 0 : i32
    return %c0_i32, %c0_i32_0 : i32, i32
  }
  func.func @transform_1(%arg0: i32) -> (i32, i32) {
    %c0_i32 = arith.constant 0 : i32
    %c0_i32_0 = arith.constant 0 : i32
    %c0_i32_1 = arith.constant 0 : i32
    return %c0_i32, %c0_i32_0 : i32, i32
  }
  func.func @transform_2(%arg0: i32) -> (i32, i32) {
    %c0_i32 = arith.constant 0 : i32
    %c0_i32_0 = arith.constant 0 : i32
    %c0_i32_1 = arith.constant 0 : i32
    return %c0_i32, %c0_i32_0 : i32, i32
  }
  func.func @transform_3(%arg0: i32) -> (i32, i32) {
    %c0_i32 = arith.constant 0 : i32
    %c0_i32_0 = arith.constant 0 : i32
    %c0_i32_1 = arith.constant 0 : i32
    return %c0_i32, %c0_i32_0 : i32, i32
  }
  func.func @transform_4(%arg0: i32) -> (i32, i32, i32) {
    %c0_i32 = arith.constant 0 : i32
    %c0_i32_0 = arith.constant 0 : i32
    %c0_i32_1 = arith.constant 0 : i32
    return %arg0, %c0_i32, %c0_i32_0 : i32, i32, i32
  }
  func.func @transform_5(%arg0: i32) -> (i32, i32, i32) {
    %c0_i32 = arith.constant 0 : i32
    %c0_i32_0 = arith.constant 0 : i32
    %c0_i32_1 = arith.constant 0 : i32
    return %arg0, %c0_i32, %c0_i32_0 : i32, i32, i32
  }
  func.func @transform_6(%arg0: i32) -> (i32, i32, i32) {
    %c0_i32 = arith.constant 0 : i32
    %c0_i32_0 = arith.constant 0 : i32
    %c0_i32_1 = arith.constant 0 : i32
    return %arg0, %c0_i32, %c0_i32_0 : i32, i32, i32
  }
  func.func @transform_7(%arg0: i32) -> (i32, i32, i32) {
    %c0_i32 = arith.constant 0 : i32
    %c0_i32_0 = arith.constant 0 : i32
    %c0_i32_1 = arith.constant 0 : i32
    return %arg0, %c0_i32, %c0_i32_0 : i32, i32, i32
  }
  func.func @transform_8(%arg0: i32) -> (i32, i32, i32) {
    %c0_i32 = arith.constant 0 : i32
    %c0_i32_0 = arith.constant 0 : i32
    %c0_i32_1 = arith.constant 0 : i32
    return %arg0, %c0_i32, %c0_i32_0 : i32, i32, i32
  }
  func.func @transform_9(%arg0: i32) -> (i32, i32, i32) {
    %c0_i32 = arith.constant 0 : i32
    %c0_i32_0 = arith.constant 0 : i32
    %c0_i32_1 = arith.constant 0 : i32
    return %arg0, %c0_i32, %c0_i32_0 : i32, i32, i32
  }
  func.func @transform_10(%arg0: i32) -> (i32, i32, i32) {
    %c0_i32 = arith.constant 0 : i32
    %c0_i32_0 = arith.constant 0 : i32
    %c0_i32_1 = arith.constant 0 : i32
    return %arg0, %c0_i32, %c0_i32_0 : i32, i32, i32
  }
  func.func @transform_11(%arg0: i32) -> (i32, i32) {
    %c0_i32 = arith.constant 0 : i32
    %c0_i32_0 = arith.constant 0 : i32
    %c0_i32_1 = arith.constant 0 : i32
    return %c0_i32, %c0_i32_0 : i32, i32
  }
  func.func @transform_12(%arg0: i32) -> (i32, i32) {
    %c0_i32 = arith.constant 0 : i32
    %c0_i32_0 = arith.constant 0 : i32
    %c0_i32_1 = arith.constant 0 : i32
    return %c0_i32, %c0_i32_0 : i32, i32
  }
  func.func @transform_13(%arg0: i32) -> (i32, i32) {
    %c0_i32 = arith.constant 0 : i32
    %c0_i32_0 = arith.constant 0 : i32
    %c0_i32_1 = arith.constant 0 : i32
    return %c0_i32, %c0_i32_0 : i32, i32
  }
  func.func @transform_14(%arg0: i32) -> (i32, i32) {
    %c0_i32 = arith.constant 0 : i32
    %c0_i32_0 = arith.constant 0 : i32
    %c0_i32_1 = arith.constant 0 : i32
    return %c0_i32, %c0_i32_0 : i32, i32
  }
  func.func @transform_15(%arg0: i32) -> (i32, i32) {
    %c0_i32 = arith.constant 0 : i32
    %c0_i32_0 = arith.constant 0 : i32
    %c0_i32_1 = arith.constant 0 : i32
    return %c0_i32, %c0_i32_0 : i32, i32
  }
}

</mosaic_0001>

<bundles_post_ra>
// kernel: tpu_custom_call.1
= control target key start
LH: loop header
LB: loop body
LE: loop exit
PB: predicated region body
PF: predicated region fallthrough
CT: control target
= control target key end

     0   :  { %s5891_s20 = smov 0   ;;  %s6501_s0 = inlined_call_operand.vmem [shape: f32[16,16], index: 0, kind: input, shape index: {}]   ;;  %s6502_s1 = inlined_call_operand.vmem [shape: f32[8,64], index: 1, kind: input, shape index: {}]   ;;  %s6503_s2 = inlined_call_operand.vmem [shape: f32[16,64], index: 2, kind: input, shape index: {}]   ;;  %s6504_s3 = inlined_call_operand.vmem [shape: f32[1,64], index: 3, kind: input, shape index: {}]   ;;  %s6505_s4 = inlined_call_operand.vmem [shape: bf16[2,64,192], index: 4, kind: input, shape index: {}]   ;;  %s6506_s5 = inlined_call_operand.vmem [shape: f32[2,1,192], index: 5, kind: input, shape index: {}]   ;;  %s6507_s6 = inlined_call_operand.vmem [shape: bf16[2,64,64], index: 6, kind: input, shape index: {}]   ;;  %s6508_s7 = inlined_call_operand.vmem [shape: f32[2,6,64], index: 7, kind: input, shape index: {}]   ;;  %s6509_s8 = inlined_call_operand.vmem [shape: bf16[2,64,2048], index: 8, kind: input, shape index: {}]   ;;  %s6510_s9 = inlined_call_operand.vmem [shape: f32[2,1,2048], index: 9, kind: input, shape index: {}]   ;;  %s6511_s10 = inlined_call_operand.vmem [shape: bf16[2,2048,64], index: 10, kind: input, shape index: {}]   ;;  %s6512_s11 = inlined_call_operand.vmem [shape: bf16[64,32], index: 11, kind: input, shape index: {}]   ;;  %s6513_s12 = inlined_call_operand.vmem [shape: f32[1,32], index: 12, kind: input, shape index: {}]   ;;  %s6514_s13 = inlined_call_operand.vmem [shape: f32[32,1], index: 13, kind: input, shape index: {}]   ;;  %s6515_s14 = inlined_call_operand.<no memory space> [shape: f32[1,1], index: 14, kind: input, shape index: {}]   ;;  %s6516_s15 = inlined_call_operand.vmem [shape: f32[2,1], index: 15, kind: output, shape index: {}]  }
   0x1   :  { %6518 = sst [smem:[#allocation5_spill]] %s6505_s4  ;;  %v20_v0 = vstv %s6515_s14 }
   0x2   :  { %6519 = sst [smem:[#allocation6_spill]] %s6506_s5  ;;  %21 = vst [vmem:[#allocation3] sm:$0x1] %v20_v0 }
   0x3   :  { %6520 = sst [smem:[#allocation7_spill]] %s6507_s6 }
   0x4   :  { %6521 = sst [smem:[#allocation8_spill]] %s6513_s12 }
   0x5   :  { %6522 = sst [smem:[#allocation9_spill]] %s6516_s15 }
   0x6 LB: > { %6523 = sst [smem:[#allocation4_spill]] %s5793_s20  ;;  %s5897_s21 = sadd.s32 4294967295, %s5793_s20   ;;  %s5793_s20 = sphi %s5891_s20, %s27_s20  }
   0x7   : > { %p4929_p0 = scmp.ge.s32.totalorder %s5793_s20, 1  ;;  %p491_p1 = scmp.lt.s32.totalorder %s5793_s20, 3 }
   0x9   : > { %p492_p2 = pnand %p4929_p0, %p491_p1 }
   0xa   : > { %p561_p3 = scmp.lt.s32.totalorder (!%p492_p2), %s5897_s21, 1  ;;  %s6524_s4 = sld [smem:[#allocation5_spill]] (!%p492_p2) }
   0xb   : > { %495 = sbr.rel (%p492_p2) target bundleno = 4806 (0x12c6), region = 80  ;;  %s6525_s5 = sld [smem:[#allocation6_spill]] (!%p492_p2) }
   0xc   : > { %s6526_s6 = sld [smem:[#allocation7_spill]] (!%p492_p2)  ;;  %p4941_p4 = scmp.ne.s32.totalorder (!%p492_p2), %s5897_s21, 0 }
  0x12   : > { %s562_s14 = scalar_select %p561_p3, %s5897_s21, 1 }
  0x13   : > { %v600_v1 = vld [vmem:[%s6503_s2] sm:$0xff] (!%p4941_p4)  ;;  %v601_v2 = vld [vmem:[%s6503_s2 + $0x8] sm:$0xff] (!%p4941_p4)  ;;  %vm609_vm0 = vcmask (!%p4941_p4), 130048   ;;  %vm694_vm1 = vcmask (!%p4941_p4), 523264  }
  0x14   : > { %s5197_s22 = sshll.u32 %s562_s14, 6  ;;  %s4932_s23 = sshll.u32 %s562_s14, 1  ;;  %v598_v3 = vld [vmem:[%s6501_s0] sm:$0xff] (!%p4941_p4)  ;;  %v5565_v4 = vpack.c.bf16 (!%p4941_p4), %v601_v2, %v600_v1  ;;  %v599_v5 = vld [vmem:[%s6501_s0 + $0x8] sm:$0xff] (!%p4941_p4) }
  0x15   : > { %s5906_s26 = scalar_lea.vmem %s6524_s4, %s5197_s22  ;;  %s5911_s29 = scalar_lea.vmem %s6525_s5, %s4932_s23  ;;  %5435 = vmatprep.mubr.msk.f32.mxu0 (!%p4941_p4), %vm609_vm0, %v598_v3  ;;  %v4942_v6 = vld [vmem:[%s6504_s3] ss:$0 sm:$0xff] (!%p4941_p4) }
  0x16   : > { %s5198_s30 = sshll.u32 %s562_s14, 5  ;;  %s4935_s16 = sshll.u32 %s562_s14, 3  ;;  %5566 = vmatprep.subr.bf16.mxu0 (!%p4941_p4), %v5565_v4  ;;  %v691_v8 = vld [vmem:[%s6502_s1] sm:$0xff] (!%p4941_p4) }
  0x17   : > { %s5916_s19 = scalar_lea.vmem %s6526_s6, %s5198_s30  ;;  %s5921_s12 = scalar_lea.vmem %s6508_s7, %s4935_s16  ;;  %5568 = vmatpush3.bf16.msra.mxu0 (!%p4941_p4), %v5565_v4 }
  0x18   : > { %s5199_s24 = sshll.u32 %s562_s14, 9  ;;  %s4938_s22 = sshll.u32 %s562_s14, 4 }
  0x19   : > { %s5926_s27 = scalar_lea.vmem %s6509_s8, %s5199_s24  ;;  %s5931_s5 = scalar_lea.vmem %s6510_s9, %s4938_s22 }
  0x1a   : > { %s5200_s17 = sshll.u32 %s562_s14, 10  ;;  %597 = sbr.rel (%p4941_p4) target bundleno = 244 (0xf4), region = 84  ;;  %5436 = vmatmul.mubr.msk.f32.vlgmr.msra.gmra.mrb[0].mxu0 (!%p4941_p4), %vm609_vm0, %v599_v5 }
  0x1b   : > { %s5936_s6 = scalar_lea.vmem %s6511_s10, %s5200_s17 }
  0xed   : > { %v5437_v7 = vpop.f32.mrb[0].mxu0 }
  0xee   : > { %v688_v9 = vadd.f32 %v5437_v7, %v4942_v6  ;;  %v682_v10 = vpop.f32.mrb[1].mxu0 }
  0xef   : > { %v683_v11 = vadd.f32 %v4942_v6, %v682_v10 }
  0xf0   : > { %v693_v12 = vadd.f32 %v691_v8, %v688_v9 }
  0xf1   : > { %v692_v13 = vadd.f32 %v691_v8, %v683_v11 }
  0xf2   : > { %696 = vst.msk [vmem:[#allocation2 + $0x8] sm:$0xff] %vm694_vm1, %v693_v12 }
  0xf3   : > { %695 = vst.msk [vmem:[#allocation2] sm:$0xff] %vm694_vm1, %v692_v13 }
  0xf4 PF: > { %v5596_v14 = vld [vmem:[%s5906_s26 + $0x4] ss:$8 sps:$4 sm:$0xff]   ;;  %v5598_v15 = vld [vmem:[%s5906_s26] ss:$8 sps:$4 sm:$0xff]   ;;  %v5795_v16 = vmov 0   ;;  %vm761_vm2 = vcmask 523264   ;;  %v711_v27 = vlaneseq }
  0xf5   : > { %797 = vmatprep.mubr.bf16.mxu0 %v5795_v16  ;;  %765 = vmatprep.subr.bf16.mxu0 %v5596_v14  ;;  %v5599_v17 = vld [vmem:[%s5906_s26 + $0x14] ss:$8 sps:$4 sm:$0xff]   ;;  %v5601_v18 = vld [vmem:[%s5906_s26 + $0x10] ss:$8 sps:$4 sm:$0xff]   ;;  %v5602_v19 = vld [vmem:[%s5906_s26 + $0x24] ss:$8 sps:$4 sm:$0xff]  }
  0xf6   : > { %766 = vmatpush1.bf16.msra.mxu0 %v5598_v15  ;;  %v5604_v20 = vld [vmem:[%s5906_s26 + $0x20] ss:$8 sps:$4 sm:$0xff]   ;;  %v5605_v21 = vld [vmem:[%s5906_s26 + $0x34] ss:$8 sps:$4 sm:$0xff]   ;;  %v5607_v22 = vld [vmem:[%s5906_s26 + $0x30] ss:$8 sps:$4 sm:$0xff]  }
  0xf7   : > { %767 = vmatprep.subr.bf16.mxu0 %v5599_v17  ;;  %v5796_v26 = vmov 0.0   ;;  %v5969_v28 = vshrl.u32 %v711_v27, 7  ;;  %vm5797_vm3 = vmmov 0   ;;  %v709_v30 = vld [vmem:[%s5911_s29] sm:$0x3]  ;;  %s5798_s26 = smov 64  }
  0xf8   : > { %5438 = vmatprep.subr.mxu1 %v5796_v26  ;;  %5440 = vmatprep.mubr.msk.f32.mxu1 %vm5797_vm3, %v5796_v26  ;;  %vm811_vm4 = vcmask 130048   ;;  %vm963_vm5 = vcmask 64512   ;;  %s5799_s29 = smov 48   ;;  %s5800_s18 = smov 112  }
  0xf9   : > { %v698_v24 = vld [vmem:[#allocation2 + $0x8] sm:$0xff]  ;;  %v5976_v29 = vsub.s32 0, %v5969_v28  ;;  %v5981_v32 = vsub.s32 1, %v5969_v28  ;;  %s5801_s15 = smov 96   ;;  %s5802_s20 = smov 16  }
  0xfa   : > { %768 = vmatpush1.bf16.msra.mxu0 %v5601_v18  ;;  %v697_v23 = vld [vmem:[#allocation2] sm:$0xff]  ;;  %s5803_s4 = smov 32   ;;  %s5804_s16 = smov 80  }
  0xfb   : > { %769 = vmatprep.subr.bf16.mxu0 %v5602_v19  ;;  %v700_v25 = vpack.c.bf16 %v698_v24, %v697_v23  ;;  %v714_v31 = vrot.slane %v709_v30, %v5976_v29  ;;  %v718_v36 = vrot.slane %v709_v30, %v5981_v32  ;;  %p5186_p5 = scmp.ne.s32.totalorder %s5897_s21, 1 }
  0xfc   : > { %vm5806_vm6 = vmmov (!%p5186_p5), 0   ;;  %vm4750_vm7 = vcmask (!%p5186_p5), 261120   ;;  %vm4824_vm8 = vcmask (!%p5186_p5), 1024  }
  0xfe   : > { %770 = vmatpush1.bf16.msra.mxu0 %v5604_v20 }
  0xff   : > { %771 = vmatprep.subr.bf16.mxu0 %v5605_v21 }
 0x102   : > { %772 = vmatpush1.bf16.msra.mxu0 %v5607_v22 }
 0x103   : > { %5463 = vmatprep.subr.mxu0 %v5796_v26 }
 0x105   : > { %4953 = vmatmul.mubr.msk.bf16.vlgmr.msra.gmra.mrb[0].mxu0 %vm761_vm2, %v700_v25 }
 0x106   : > { %5465 = vmatprep.mubr.msk.f32.mxu0 %vm5797_vm3, %v5796_v26 }
 0x1d8   : > { %v799_v33 = vpop.f32.mrb[0].mxu0 }
 0x1d9   : > { %v5983_v34 = vadd.f32 %v799_v33, %v714_v31  ;;  %v801_v35 = vpop.f32.mrb[1].mxu0 }
 0x1da   : > { %v803_v37 = vpop.f32.mrb[2].mxu0  ;;  %v6000_v43 = vadd.f32 %v801_v35, %v718_v36 }
 0x1db   : > { %v805_v38 = vpop.f32.mrb[3].mxu0  ;;  %809 = vrot.lane.b32.xlu0 %v5983_v34, %s5798_s26  ;;  %v5989_v40 = vadd.f32 %v803_v37, %v714_v31  ;;  %v5608_v37 = vld [vmem:[%s5916_s19] sm:$0xff]  }
 0x1dc   : > { %v5987_v39 = vadd.f32 %v805_v38, %v718_v36 }
 0x1df   : > { %887 = vrot.lane.b32.xlu0 %v5989_v40, %s5798_s26 }
 0x24d   : > { %v810_v41 = vpop.permute.xlu0 %809 }
 0x24e   : > { %5439 = vmatpush3.xpose.msk.msra.mxu1 %vm811_vm4, %v810_v41 }
 0x24f   : > { %5443 = vmatprep.subr.mxu1 %v5796_v26 }
 0x251   : > { %5441 = vmatmul.mubr.msk.f32.vlgmr.msra.gmra.mrb[0].mxu1 %vm811_vm4, %v5983_v34  ;;  %v888_v42 = vpop.permute.xlu0 %887 }
 0x252   : > { %5444 = vmatpush3.xpose.msk.msra.mxu1 %vm811_vm4, %v888_v42  ;;  %5445 = vmatprep.mubr.msk.f32.mxu1 %vm5797_vm3, %v5796_v26 }
 0x253   : > { %5448 = vmatprep.subr.mxu1 %v5796_v26 }
 0x255   : > { %5446 = vmatmul.mubr.msk.f32.vlgmr.msra.gmra.mrb[2].mxu1 %vm811_vm4, %v5989_v40 }
 0x256   : > { %5449 = vmatpush3.msra.mxu1 %v6000_v43  ;;  %5450 = vmatprep.mubr.msk.f32.mxu1 %vm5797_vm3, %v5796_v26 }
 0x257   : > { %5453 = vmatprep.subr.mxu1 %v5796_v26 }
 0x324   : > { %v882_v44 = vpop.f32.mrb[0].mxu1 }
 0x325   : > { %v5442_v45 = vpop.f32.mrb[1].mxu1  ;;  %v964_v46 = vsel %vm963_vm5, %v882_v44, -inf }
 0x326   : > { %965 = vmax.xlane.f32.xlu1 %v964_v46 }
 0x328   : > { %v959_v47 = vpop.f32.mrb[2].mxu1 }
 0x329   : > { %v5447_v48 = vpop.f32.mrb[3].mxu1  ;;  %v967_v49 = vsel %vm963_vm5, %v959_v47, -inf }
 0x32a   : > { %968 = vmax.xlane.f32.xlu1 %v967_v49 }
 0x33b   : > { %1137 = vrot.lane.b32.xlu1 %v5983_v34, %s5799_s29 }
 0x33f   : > { %1215 = vrot.lane.b32.xlu1 %v5989_v40, %s5799_s29 }
 0x343   : > { %1135 = vrot.lane.b32.xlu1 %v5983_v34, %s5800_s18 }
 0x3b3   : > { %v966_v50 = vpop.xlane.xlu1 %965 }
 0x3b4   : > { %v970_v51 = vsub.f32 %v882_v44, %v966_v50 }
 0x3b6   : > { %v972_v52 = vmul.f32 1.442695, %v970_v51 }
 0x3b7   : > { %v969_v53 = vpop.xlane.xlu1 %968 }
 0x3b8   : > { %5740 = vpow2.f32 %v972_v52  ;;  %v971_v54 = vsub.f32 %v959_v47, %v969_v53  ;;  %v5609_v47 = vld [vmem:[%s5916_s19 + $0x8] sm:$0xff]  }
 0x3ba   : > { %v974_v55 = vmul.f32 1.442695, %v971_v54 }
 0x3bb   : > { %v1138_v56 = vpop.permute.xlu1 %1137 }
 0x3bc   : > { %5742 = vpow2.f32 %v974_v55 }
 0x3bf   : > { %v1216_v57 = vpop.permute.xlu1 %1215 }
 0x3c0   : > { %5464 = vmatpush3.xpose.msk.msra.mxu0 %vm811_vm4, %v1216_v57 }
 0x3c1   : > { %5473 = vmatprep.subr.mxu0 %v5796_v26 }
 0x3c2   : > { %v5741_v58 = vpop.eup %5740 }
 0x3c3   : > { %v976_v59 = vsel %vm963_vm5, %v5741_v58, 0.0  ;;  %v1136_v62 = vpop.permute.xlu1 %1135 }
 0x3c4   : > { %977 = vadd.xlane.f32.xlu0 %v976_v59 }
 0x3c6   : > { %v5743_v60 = vpop.eup %5742 }
 0x3c7   : > { %v979_v61 = vsel %vm963_vm5, %v5743_v60, 0.0 }
 0x3c8   : > { %980 = vadd.xlane.f32.xlu1 %v979_v61 }
 0x3d9   : > { %1213 = vrot.lane.b32.xlu1 %v5989_v40, %s5800_s18 }
 0x451   : > { %v978_v63 = vpop.xlane.xlu0 %977 }
 0x452   : > { %5744 = vrcp.f32 %v978_v63 }
 0x455   : > { %v981_v0 = vpop.xlane.xlu1 %980 }
 0x456   : > { %5746 = vrcp.f32 %v981_v0 }
 0x459   : > { %v1214_v1 = vpop.permute.xlu1 %1213 }
 0x45a   : > { %5466 = vmatmul.mubr.msk.f32.vlgmr.msra.gmra.mrb[4].mxu0 %vm811_vm4, %v1214_v1 }
 0x45b   : > { %5475 = vmatprep.mubr.msk.f32.mxu0 %vm5797_vm3, %v5796_v26 }
 0x45c   : > { %v5745_v2 = vpop.eup %5744 }
 0x45d   : > { %v984_v3 = vmul.f32 %v5745_v2, %v5741_v58 }
 0x45f   : > { %5451 = vmatmul.mubr.msk.f32.vlgmr.msra.gmra.mrb[4].mxu1 %vm963_vm5, %v984_v3 }
 0x460   : > { %v5747_v4 = vpop.eup %5746  ;;  %5454 = vmatpush3.msra.mxu1 %v5987_v39  ;;  %5455 = vmatprep.mubr.msk.f32.mxu1 %vm5797_vm3, %v5796_v26 }
 0x461   : > { %v985_v5 = vmul.f32 %v5747_v4, %v5743_v60  ;;  %5458 = vmatprep.subr.mxu1 %v5796_v26 }
 0x463   : > { %5456 = vmatmul.mubr.msk.f32.vlgmr.msra.gmra.mrb[6].mxu1 %vm963_vm5, %v985_v5 }
 0x464   : > { %5460 = vmatprep.mubr.msk.f32.mxu1 %vm5797_vm3, %v5796_v26 }
 0x467   : > { %5459 = vmatpush3.xpose.msk.msra.mxu1 %vm811_vm4, %v1138_v56 }
 0x468   : > { %5468 = vmatprep.subr.mxu1 %v5796_v26 }
 0x46a   : > { %5461 = vmatmul.mubr.msk.f32.vlgmr.msra.gmra.mrb[8].mxu1 %vm811_vm4, %v1136_v62 }
 0x46b   : > { %5470 = vmatprep.mubr.msk.f32.mxu1 %vm5797_vm3, %v5796_v26 }
 0x52d   : > { %v1287_v6 = vpop.f32.mrb[4].mxu0 }
 0x52e   : > { %v5467_v7 = vpop.f32.mrb[5].mxu0  ;;  %v1294_v8 = vsel %vm963_vm5, %v1287_v6, -inf }
 0x52f   : > { %1295 = vmax.xlane.f32.xlu1 %v1294_v8 }
 0x532   : > { %v1055_v9 = vpop.f32.mrb[4].mxu1 }
 0x533   : > { %v5452_v10 = vpop.f32.mrb[5].mxu1 }
 0x536   : > { %v1128_v11 = vpop.f32.mrb[6].mxu1 }
 0x537   : > { %v1132_v12 = vpack.c.bf16 %v1128_v11, %v1055_v9  ;;  %v5457_v13 = vpop.f32.mrb[7].mxu1 }
 0x53d   : > { %v1209_v14 = vpop.f32.mrb[8].mxu1 }
 0x53e   : > { %v5462_v15 = vpop.f32.mrb[9].mxu1  ;;  %v1291_v17 = vsel %vm963_vm5, %v1209_v14, -inf }
 0x53f   : > { %1292 = vmax.xlane.f32.xlu0 %v1291_v17 }
 0x540   : > { %1648 = vrot.lane.b32.xlu1 %v5989_v40, %s5801_s15 }
 0x544   : > { %1957 = vrot.lane.b32.xlu1 %v5983_v34, %s5802_s20 }
 0x5bc   : > { %v1296_v18 = vpop.xlane.xlu1 %1295 }
 0x5bd   : > { %v1298_v19 = vsub.f32 %v1287_v6, %v1296_v18 }
 0x5bf   : > { %v1301_v20 = vmul.f32 1.442695, %v1298_v19 }
 0x5c0   : > { %v1649_v46 = vpop.permute.xlu1 %1648 }
 0x5c1   : > { %5748 = vpow2.f32 %v1301_v20 }
 0x5cb   : > { %v5749_v21 = vpop.eup %5748 }
 0x5cc   : > { %v1306_v22 = vsel %vm963_vm5, %v5749_v21, 0.0  ;;  %v1293_v23 = vpop.xlane.xlu0 %1292 }
 0x5cd   : > { %1307 = vadd.xlane.f32.xlu0 %v1306_v22  ;;  %v1297_v24 = vsub.f32 %v1209_v14, %v1293_v23 }
 0x5cf   : > { %v1299_v25 = vmul.f32 1.442695, %v1297_v24 }
 0x5d1   : > { %5750 = vpow2.f32 %v1299_v25 }
 0x5db   : > { %v5751_v27 = vpop.eup %5750 }
 0x5dc   : > { %v1303_v30 = vsel %vm963_vm5, %v5751_v27, 0.0 }
 0x5e3   : > { %1314 = vrot.lane.b32.xlu0 %v6000_v43, %s5800_s18 }
 0x602   : > { %1304 = vadd.xlane.f32.xlu0 %v1303_v30 }
 0x618   : > { %1391 = vrot.lane.b32.xlu0 %v5987_v39, %s5800_s18 }
 0x61c   : > { %1650 = vrot.lane.b32.xlu0 %v5989_v40, %s5803_s4 }
 0x620   : > { %1572 = vrot.lane.b32.xlu0 %v5983_v34, %s5803_s4 }
 0x624   : > { %1570 = vrot.lane.b32.xlu0 %v5983_v34, %s5801_s15 }
 0x65a   : > { %v1308_v31 = vpop.xlane.xlu0 %1307 }
 0x65b   : > { %5752 = vrcp.f32 %v1308_v31 }
 0x65e   : > { %v1315_v33 = vpop.permute.xlu0 %1314 }
 0x65f   : > { %5469 = vmatpush3.msra.mxu1 %v1315_v33 }
 0x660   : > { %5478 = vmatprep.subr.bf16.mxu1 %v5796_v26 }
 0x665   : > { %v5753_v36 = vpop.eup %5752 }
 0x666   : > { %v1312_v38 = vmul.f32 %v5753_v36, %v5749_v21 }
 0x68f   : > { %v1305_v35 = vpop.xlane.xlu0 %1304 }
 0x690   : > { %5754 = vrcp.f32 %v1305_v35 }
 0x693   : > { %v1392_v41 = vpop.permute.xlu0 %1391 }
 0x694   : > { %5474 = vmatpush3.msra.mxu0 %v1392_v41 }
 0x695   : > { %5476 = vmatmul.mubr.msk.f32.vlgmr.msra.gmra.mrb[6].mxu0 %vm963_vm5, %v1312_v38  ;;  %5484 = vmatprep.subr.bf16.mxu0 %v5796_v26 }
 0x696   : > { %5485 = vmatpush3.bf16.msra.mxu0 %v5608_v37  ;;  %5486 = vmatprep.mubr.msk.bf16.mxu0 %vm5797_vm3, %v5796_v26 }
 0x697   : > { %5495 = vmatprep.subr.mxu0 %v5796_v26  ;;  %v1651_v45 = vpop.permute.xlu0 %1650 }
 0x699   : > { %5487 = vmatmul.mubr.msk.bf16.vlgmr.msra.gmra.mrb[8].mxu0 %vm811_vm4, %v1132_v12 }
 0x69a   : > { %v5755_v42 = vpop.eup %5754  ;;  %5497 = vmatprep.mubr.msk.f32.mxu0 %vm5797_vm3, %v5796_v26 }
 0x69b   : > { %v1311_v44 = vmul.f32 %v5755_v42, %v5751_v27  ;;  %v1573_v57 = vpop.permute.xlu0 %1572  ;;  %v5610_v42 = vld [vmem:[%s5916_s19 + $0x10] sm:$0xff]  }
 0x69d   : > { %5471 = vmatmul.mubr.msk.f32.vlgmr.msra.gmra.mrb[10].mxu1 %vm963_vm5, %v1311_v44 }
 0x69e   : > { %5480 = vmatprep.mubr.msk.bf16.mxu1 %vm5797_vm3, %v5796_v26  ;;  %5479 = vmatpush3.bf16.msra.mxu1 %v5609_v47 }
 0x69f   : > { %5496 = vmatpush3.xpose.msk.msra.mxu0 %vm811_vm4, %v1651_v45  ;;  %5490 = vmatprep.subr.mxu1 %v5796_v26  ;;  %v1571_v61 = vpop.permute.xlu0 %1570 }
 0x6a0   : > { %5505 = vmatprep.subr.mxu0 %v5796_v26 }
 0x6a2   : > { %5498 = vmatmul.mubr.msk.f32.vlgmr.msra.gmra.mrb[12].mxu0 %vm811_vm4, %v1649_v46 }
 0x6a3   : > { %5507 = vmatprep.mubr.msk.f32.mxu0 %vm5797_vm3, %v5796_v26 }
 0x768   : > { %v1463_v48 = vpop.f32.mrb[6].mxu0 }
 0x769   : > { %v5477_v49 = vpop.f32.mrb[7].mxu0 }
 0x76c   : > { %v1563_v50 = vpop.f32.mrb[8].mxu0 }
 0x76d   : > { %v5488_v51 = vpop.f32.mrb[9].mxu0 }
 0x76e   : > { %v1566_v52 = vpop.f32.mrb[10].mxu0 }
 0x76f   : > { %v5489_v53 = vpop.f32.mrb[11].mxu0 }
 0x770   : > { %v1386_v54 = vpop.f32.mrb[10].mxu1 }
 0x771   : > { %v1467_v55 = vpack.c.bf16 %v1463_v48, %v1386_v54  ;;  %v5472_v56 = vpop.f32.mrb[11].mxu1 }
 0x773   : > { %5481 = vmatmul.mubr.msk.bf16.vlgmr.msra.gmra.mrb[12].mxu1 %vm811_vm4, %v1467_v55 }
 0x774   : > { %5491 = vmatpush3.xpose.msk.msra.mxu1 %vm811_vm4, %v1573_v57  ;;  %5492 = vmatprep.mubr.msk.f32.mxu1 %vm5797_vm3, %v5796_v26 }
 0x775   : > { %v1722_v58 = vpop.f32.mrb[12].mxu0  ;;  %5500 = vmatprep.subr.mxu1 %v5796_v26 }
 0x776   : > { %v5499_v59 = vpop.f32.mrb[13].mxu0  ;;  %v1729_v60 = vsel %vm963_vm5, %v1722_v58, -inf }
 0x777   : > { %1730 = vmax.xlane.f32.xlu0 %v1729_v60 }
 0x77b   : > { %5493 = vmatmul.mubr.msk.f32.vlgmr.msra.gmra.mrb[16].mxu1 %vm811_vm4, %v1571_v61 }
 0x77c   : > { %5502 = vmatprep.mubr.msk.f32.mxu1 %vm5797_vm3, %v5796_v26 }
 0x78d   : > { %1824 = vrot.lane.b32.xlu0 %v5987_v39, %s5801_s15 }
 0x791   : > { %1955 = vrot.lane.b32.xlu0 %v5983_v34, %s5804_s16 }
 0x795   : > { %2035 = vrot.lane.b32.xlu0 %v5989_v40, %s5802_s20  ;;  %s6527_s20 = sld [smem:[#allocation8_spill]] (!%p5186_p5) }
 0x804   : > { %v1731_v62 = vpop.xlane.xlu0 %1730 }
 0x805   : > { %v1733_v63 = vsub.f32 %v1722_v58, %v1731_v62 }
 0x807   : > { %v1736_v0 = vmul.f32 1.442695, %v1733_v63 }
 0x808   : > { %v1825_v1 = vpop.permute.xlu0 %1824 }
 0x809   : > { %5756 = vpow2.f32 %v1736_v0  ;;  %5506 = vmatpush3.msra.mxu0 %v1825_v1  ;;  %v5611_v0 = vld [vmem:[%s5916_s19 + $0x18] sm:$0xff]  }
 0x80a   : > { %5516 = vmatprep.subr.mxu0 %v5796_v26 }
 0x80c   : > { %v1956_v14 = vpop.permute.xlu0 %1955 }
 0x810   : > { %v2036_v17 = vpop.permute.xlu0 %2035 }
 0x813   : > { %v5757_v2 = vpop.eup %5756 }
 0x814   : > { %v1741_v3 = vsel %vm963_vm5, %v5757_v2, 0.0 }
 0x815   : > { %1742 = vadd.xlane.f32.xlu1 %v1741_v3 }
 0x826   : > { %2033 = vrot.lane.b32.xlu1 %v5989_v40, %s5804_s16  ;;  %v1958_v40 = vpop.permute.xlu1 %1957 }
 0x846   : > { %v1513_v4 = vpop.f32.mrb[12].mxu1 }
 0x847   : > { %v6091_v34 = vadd.f32 %v1563_v50, %v1513_v4  ;;  %v5482_v5 = vpop.f32.mrb[13].mxu1 }
 0x848   : > { %v1516_v6 = vpop.f32.mrb[14].mxu1 }
 0x849   : > { %v6093_v7 = vadd.f32 %v1566_v52, %v1516_v6  ;;  %v5483_v8 = vpop.f32.mrb[15].mxu1 }
 0x84e   : > { %v1644_v9 = vpop.f32.mrb[16].mxu1 }
 0x84f   : > { %v5494_v10 = vpop.f32.mrb[17].mxu1  ;;  %v1726_v11 = vsel %vm963_vm5, %v1644_v9, -inf }
 0x850   : > { %1727 = vmax.xlane.f32.xlu0 %v1726_v11 }
 0x866   : > { %1748 = vrot.lane.b32.xlu0 %v6000_v43, %s5801_s15 }
 0x86a   : > { %2133 = vrot.lane.b32.xlu0 %v6000_v43, %s5804_s16 }
 0x8a2   : > { %v1743_v12 = vpop.xlane.xlu1 %1742 }
 0x8a3   : > { %5758 = vrcp.f32 %v1743_v12 }
 0x8a6   : > { %v2034_v43 = vpop.permute.xlu1 %2033 }
 0x8ad   : > { %v5759_v13 = vpop.eup %5758 }
 0x8ae   : > { %v1747_v15 = vmul.f32 %v5759_v13, %v5757_v2 }
 0x8b0   : > { %5508 = vmatmul.mubr.msk.f32.vlgmr.msra.gmra.mrb[14].mxu0 %vm963_vm5, %v1747_v15 }
 0x8b1   : > { %5517 = vmatpush3.xpose.msk.msra.mxu0 %vm811_vm4, %v1958_v40  ;;  %5518 = vmatprep.mubr.msk.f32.mxu0 %vm5797_vm3, %v5796_v26  ;;  %v6141_v40 = vld [vmem:[%s5921_s12] sm:$0x3f] }
 0x8b2   : > { %5521 = vmatprep.subr.mxu0 %v5796_v26 }
 0x8b4   : > { %5519 = vmatmul.mubr.msk.f32.vlgmr.msra.gmra.mrb[16].mxu0 %vm811_vm4, %v1956_v14 }
 0x8b5   : > { %5522 = vmatpush3.xpose.msk.msra.mxu0 %vm811_vm4, %v2036_v17  ;;  %5523 = vmatprep.mubr.msk.f32.mxu0 %vm5797_vm3, %v5796_v26 }
 0x8b6   : > { %5531 = vmatprep.subr.mxu0 %v5796_v26 }
 0x8b8   : > { %5524 = vmatmul.mubr.msk.f32.vlgmr.msra.gmra.mrb[18].mxu0 %vm811_vm4, %v2034_v43 }
 0x8b9   : > { %5533 = vmatprep.mubr.msk.f32.mxu0 %vm5797_vm3, %v5796_v26 }
 0x8dd   : > { %v1728_v18 = vpop.xlane.xlu0 %1727 }
 0x8de   : > { %v1732_v19 = vsub.f32 %v1644_v9, %v1728_v18 }
 0x8e0   : > { %v1734_v20 = vmul.f32 1.442695, %v1732_v19  ;;  %v5781_v19 = vld [vmem:[#allocation2 + $0x8] sm:$0xff] }
 0x8e1   : > { %v1749_v21 = vpop.permute.xlu0 %1748 }
 0x8e2   : > { %5760 = vpow2.f32 %v1734_v20  ;;  %5501 = vmatpush3.msra.mxu1 %v1749_v21 }
 0x8e3   : > { %5510 = vmatprep.subr.bf16.mxu1 %v5796_v26 }
 0x8e5   : > { %v2134_v57 = vpop.permute.xlu0 %2133 }
 0x8ec   : > { %v5761_v22 = vpop.eup %5760 }
 0x8ed   : > { %v1738_v23 = vsel %vm963_vm5, %v5761_v22, 0.0 }
 0x8ee   : > { %1739 = vadd.xlane.f32.xlu1 %v1738_v23 }
 0x97b   : > { %v1740_v24 = vpop.xlane.xlu1 %1739 }
 0x97c   : > { %5762 = vrcp.f32 %v1740_v24 }
 0x983   : > { %v1896_v25 = vpop.f32.mrb[14].mxu0 }
 0x984   : > { %v5509_v27 = vpop.f32.mrb[15].mxu0 }
 0x986   : > { %v5763_v30 = vpop.eup %5762 }
 0x987   : > { %v1746_v31 = vmul.f32 %v5763_v30, %v5761_v22  ;;  %v2029_v33 = vpop.f32.mrb[16].mxu0 }
 0x988   : > { %v5520_v35 = vpop.f32.mrb[17].mxu0  ;;  %v2111_v36 = vsel %vm963_vm5, %v2029_v33, -inf }
 0x989   : > { %2112 = vmax.xlane.f32.xlu1 %v2111_v36  ;;  %5503 = vmatmul.mubr.msk.f32.vlgmr.msra.gmra.mrb[18].mxu1 %vm963_vm5, %v1746_v31 }
 0x98a   : > { %5512 = vmatprep.mubr.msk.bf16.mxu1 %vm5797_vm3, %v5796_v26  ;;  %5511 = vmatpush3.bf16.msra.mxu1 %v5610_v42  ;;  %v2388_v42 = vld [vmem:[%s5926_s27] sm:$0xff] }
 0x98b   : > { %v2107_v37 = vpop.f32.mrb[18].mxu0  ;;  %5526 = vmatprep.subr.mxu1 %v5796_v26 }
 0x98c   : > { %v5525_v38 = vpop.f32.mrb[19].mxu0  ;;  %v2114_v41 = vsel %vm963_vm5, %v2107_v37, -inf }
 0x98d   : > { %2115 = vmax.xlane.f32.xlu1 %v2114_v41 }
 0xa16   : > { %v2113_v44 = vpop.xlane.xlu1 %2112 }
 0xa17   : > { %v2117_v45 = vsub.f32 %v2029_v33, %v2113_v44  ;;  %v2396_v44 = vld [vmem:[%s5926_s27 + $0x40] sm:$0xff] }
 0xa19   : > { %v2119_v46 = vmul.f32 1.442695, %v2117_v45  ;;  %v2389_v45 = vld [vmem:[%s5926_s27 + $0x8] sm:$0xff] }
 0xa1a   : > { %v2116_v47 = vpop.xlane.xlu1 %2115 }
 0xa1b   : > { %5764 = vpow2.f32 %v2119_v46  ;;  %v2118_v48 = vsub.f32 %v2107_v37, %v2116_v47  ;;  %v4987_v46 = vcombine.high %v2388_v42, %v2396_v44  ;;  %v2397_v47 = vld [vmem:[%s5926_s27 + $0x48] sm:$0xff] }
 0xa1d   : > { %v2121_v49 = vmul.f32 1.442695, %v2118_v48  ;;  %v4986_v48 = vcombine.low %v2388_v42, %v2396_v44  ;;  %v2407_v42 = vld [vmem:[%s5926_s27 + $0x98] sm:$0xff] }
 0xa1e   : > { %v2415_v44 = vld [vmem:[%s5926_s27 + $0xd8] sm:$0xff] }
 0xa1f   : > { %5766 = vpow2.f32 %v2121_v49  ;;  %v4988_v49 = vcombine.low %v2389_v45, %v2397_v47 }
 0xa25   : > { %v5765_v50 = vpop.eup %5764 }
 0xa26   : > { %v2123_v51 = vsel %vm963_vm5, %v5765_v50, 0.0 }
 0xa27   : > { %2124 = vadd.xlane.f32.xlu1 %v2123_v51  ;;  %v2404_v51 = vld [vmem:[%s5926_s27 + $0x80] sm:$0xff] }
 0xa29   : > { %v5767_v52 = vpop.eup %5766 }
 0xa2a   : > { %v2126_v53 = vsel %vm963_vm5, %v5767_v52, 0.0 }
 0xa2b   : > { %2127 = vadd.xlane.f32.xlu1 %v2126_v53  ;;  %v2405_v53 = vld [vmem:[%s5926_s27 + $0x88] sm:$0xff] }
 0xa3c   : > { %2209 = vrot.lane.b32.xlu1 %v5987_v39, %s5804_s16 }
 0xa5c   : > { %v1820_v54 = vpop.f32.mrb[18].mxu1 }
 0xa5d   : > { %v1900_v55 = vpack.c.bf16 %v1896_v25, %v1820_v54  ;;  %v5504_v56 = vpop.f32.mrb[19].mxu1 }
 0xa5f   : > { %5513 = vmatmul.mubr.msk.bf16.vlgmr.msra.gmra.mrb[20].mxu1 %vm811_vm4, %v1900_v55  ;;  %v2413_v55 = vld [vmem:[%s5926_s27 + $0xc8] sm:$0xff] }
 0xa60   : > { %5527 = vmatpush3.msra.mxu1 %v2134_v57  ;;  %5528 = vmatprep.mubr.msk.f32.mxu1 %vm5797_vm3, %v5796_v26  ;;  %v5004_v57 = vcombine.low %v2405_v53, %v2413_v55 }
 0xa61   : > { %5536 = vmatprep.subr.bf16.mxu1 %v5796_v26 }
 0xab4   : > { %v2125_v58 = vpop.xlane.xlu1 %2124 }
 0xab5   : > { %5768 = vrcp.f32 %v2125_v58  ;;  %v5005_v58 = vcombine.high %v2405_v53, %v2413_v55  ;;  %v2438_v55 = vld [vmem:[%s5926_s27 + $0x190] sm:$0xff] }
 0xab8   : > { %v2128_v59 = vpop.xlane.xlu1 %2127 }
 0xab9   : > { %5770 = vrcp.f32 %v2128_v59  ;;  %v2420_v59 = vld [vmem:[%s5926_s27 + $0x100] sm:$0xff] }
 0xabc   : > { %v2210_v60 = vpop.permute.xlu1 %2209 }
 0xabd   : > { %5532 = vmatpush3.msra.mxu0 %v2210_v60  ;;  %v2428_v60 = vld [vmem:[%s5926_s27 + $0x140] sm:$0xff] }
 0xabe   : > { %2859 = vmatprep.subr.bf16.mxu0 %v4987_v46 }
 0xabf   : > { %v5769_v39 = vpop.eup %5768 }
 0xac0   : > { %v2131_v61 = vmul.f32 %v5769_v39, %v5765_v50  ;;  %v4989_v50 = vcombine.high %v2389_v45, %v2397_v47  ;;  %v2421_v39 = vld [vmem:[%s5926_s27 + $0x108] sm:$0xff] }
 0xac2   : > { %5529 = vmatmul.mubr.msk.f32.vlgmr.msra.gmra.mrb[24].mxu1 %vm963_vm5, %v2131_v61  ;;  %v5019_v61 = vcombine.high %v2420_v59, %v2428_v60 }
 0xac3   : > { %v5771_v62 = vpop.eup %5770  ;;  %5538 = vmatprep.mubr.msk.bf16.mxu1 %vm5797_vm3, %v5796_v26  ;;  %5537 = vmatpush3.bf16.msra.mxu1 %v5611_v0 }
 0xac4   : > { %v2132_v63 = vmul.f32 %v5771_v62, %v5767_v52  ;;  %2902 = vmatprep.subr.bf16.mxu1 %v4989_v50  ;;  %v2412_v52 = vld [vmem:[%s5926_s27 + $0xc0] sm:$0xff]  ;;  %v2429_v62 = vld [vmem:[%s5926_s27 + $0x148] sm:$0xff]  ;;  %v2431_v50 = vld [vmem:[%s5926_s27 + $0x158] sm:$0xff] }
 0xac5   : > { %v5003_v54 = vcombine.high %v2404_v51, %v2412_v52  ;;  %v5002_v56 = vcombine.low %v2404_v51, %v2412_v52  ;;  %v5020_v0 = vcombine.low %v2421_v39, %v2429_v62  ;;  %v5008_v52 = vcombine.low %v2407_v42, %v2415_v44 }
 0xac6   : > { %5534 = vmatmul.mubr.msk.f32.vlgmr.msra.gmra.mrb[20].mxu0 %vm963_vm5, %v2132_v63  ;;  %v5018_v63 = vcombine.low %v2420_v59, %v2428_v60 }
 0xac7   : > { %2891 = vmatprep.mubr.bf16.mxu0 %v5795_v16  ;;  %2860 = vmatpush1.bf16.msra.mxu0 %v4986_v48  ;;  %v2422_v48 = vld [vmem:[%s5926_s27 + $0x110] sm:$0xff] }
 0xac8   : > { %2861 = vmatprep.subr.bf16.mxu0 %v5003_v54 }
 0xacb   : > { %2862 = vmatpush1.bf16.msra.mxu0 %v5002_v56  ;;  %v2446_v56 = vld [vmem:[%s5926_s27 + $0x1d0] sm:$0xff] }
 0xacc   : > { %2863 = vmatprep.subr.bf16.mxu0 %v5019_v61 }
 0xacf   : > { %2864 = vmatpush1.bf16.msra.mxu0 %v5018_v63  ;;  %v2400_v63 = vld [vmem:[%s5926_s27 + $0x60] sm:$0xff] }
 0xb32   : > { %v1946_v1 = vpop.f32.mrb[20].mxu1 }
 0xb33   : > { %v1953_v2 = vadd.f32 %v1946_v1, %v6091_v34  ;;  %v5514_v3 = vpop.f32.mrb[21].mxu1  ;;  %v2345_v34 = vrot.slane %v6141_v40, %v5976_v29  ;;  %v5021_v1 = vcombine.high %v2421_v39, %v2429_v62  ;;  %v5039_v39 = vcombine.high %v2438_v55, %v2446_v56  ;;  %v2392_v62 = vld [vmem:[%s5926_s27 + $0x20] sm:$0xff] }
 0xb34   : > { %v1949_v4 = vpop.f32.mrb[22].mxu1  ;;  %v2444_v3 = vld [vmem:[%s5926_s27 + $0x1c0] sm:$0xff] }
 0xb35   : > { %v1954_v5 = vadd.f32 %v1949_v4, %v6093_v7  ;;  %v5515_v6 = vpop.f32.mrb[23].mxu1  ;;  %v5780_v7 = vld [vmem:[#allocation2] sm:$0xff]  ;;  %v2437_v4 = vld [vmem:[%s5926_s27 + $0x188] sm:$0xff] }
 0xb36   : > { %v2445_v6 = vld [vmem:[%s5926_s27 + $0x1c8] sm:$0xff] }
 0xb95   : > { %v2205_v8 = vpop.f32.mrb[24].mxu1 }
 0xb96   : > { %v5530_v9 = vpop.f32.mrb[25].mxu1 }
 0xb97   : > { %v5036_v9 = vcombine.low %v2437_v4, %v2445_v6 }
 0xb99   : > { %v2281_v10 = vpop.f32.mrb[20].mxu0 }
 0xb9a   : > { %v2285_v26 = vpack.c.bf16 %v2281_v10, %v2205_v8  ;;  %v5535_v11 = vpop.f32.mrb[21].mxu0  ;;  %v5037_v10 = vcombine.high %v2437_v4, %v2445_v6  ;;  %v4995_v4 = vcombine.high %v2392_v62, %v2400_v63  ;;  %v2408_v6 = vld [vmem:[%s5926_s27 + $0xa0] sm:$0xff] }
 0xb9b   : > { %v2398_v11 = vld [vmem:[%s5926_s27 + $0x50] sm:$0xff] }
 0xb9c   : > { %5539 = vmatmul.mubr.msk.bf16.vlgmr.msra.gmra.mrb[28].mxu1 %vm811_vm4, %v2285_v26  ;;  %v2390_v26 = vld [vmem:[%s5926_s27 + $0x10] sm:$0xff] }
 0xb9d   : > { %2934 = vmatprep.mubr.bf16.mxu1 %v5795_v16  ;;  %2903 = vmatpush1.bf16.msra.mxu1 %v4988_v49  ;;  %v2423_v49 = vld [vmem:[%s5926_s27 + $0x118] sm:$0xff] }
 0xb9e   : > { %2904 = vmatprep.subr.bf16.mxu1 %v5005_v58  ;;  %v5025_v54 = vcombine.high %v2423_v49, %v2431_v50  ;;  %v2447_v58 = vld [vmem:[%s5926_s27 + $0x1d8] sm:$0xff]  ;;  %v5024_v60 = vcombine.low %v2423_v49, %v2431_v50 }
 0xb9f   : > { %v2411_v49 = vld [vmem:[%s5926_s27 + $0xb8] sm:$0xff] }
 0xba0   : > { %v2419_v50 = vld [vmem:[%s5926_s27 + $0xf8] sm:$0xff] }
 0xba1   : > { %2905 = vmatpush1.bf16.msra.mxu1 %v5004_v57  ;;  %v2439_v57 = vld [vmem:[%s5926_s27 + $0x198] sm:$0xff] }
 0xba2   : > { %2906 = vmatprep.subr.bf16.mxu1 %v5021_v1  ;;  %v5041_v61 = vcombine.high %v2439_v57, %v2447_v58  ;;  %v2401_v1 = vld [vmem:[%s5926_s27 + $0x68] sm:$0xff] }
 0xba5   : > { %2907 = vmatpush1.bf16.msra.mxu1 %v5020_v0  ;;  %v2393_v0 = vld [vmem:[%s5926_s27 + $0x28] sm:$0xff] }
 0xba6   : > { %2908 = vmatprep.subr.bf16.mxu1 %v5037_v10  ;;  %v2417_v10 = vld [vmem:[%s5926_s27 + $0xe8] sm:$0xff] }
 0xba9   : > { %2909 = vmatpush1.bf16.msra.mxu1 %v5036_v9  ;;  %v2409_v9 = vld [vmem:[%s5926_s27 + $0xa8] sm:$0xff] }
 0xc6f   : > { %v2331_v12 = vpop.f32.mrb[28].mxu1 }
 0xc70   : > { %v2338_v13 = vadd.f32 %v2331_v12, %v1953_v2  ;;  %v5540_v14 = vpop.f32.mrb[29].mxu1  ;;  %v2436_v2 = vld [vmem:[%s5926_s27 + $0x180] sm:$0xff]  ;;  %v2391_v12 = vld [vmem:[%s5926_s27 + $0x18] sm:$0xff] }
 0xc71   : > { %v2334_v15 = vpop.f32.mrb[30].mxu1  ;;  %v5034_v8 = vcombine.low %v2436_v2, %v2444_v3  ;;  %v4991_v14 = vcombine.high %v2390_v26, %v2398_v11 }
 0xc72   : > { %v2340_v17 = vadd.f32 %v5780_v7, %v2338_v13  ;;  %v2339_v43 = vadd.f32 %v2334_v15, %v1954_v5  ;;  %v5541_v18 = vpop.f32.mrb[31].mxu1  ;;  %v5035_v5 = vcombine.high %v2436_v2, %v2444_v3  ;;  %v4990_v13 = vcombine.low %v2390_v26, %v2398_v11 }
 0xc73   : > { %v5038_v2 = vcombine.low %v2438_v55, %v2446_v56  ;;  %v5040_v3 = vcombine.low %v2439_v57, %v2447_v58  ;;  %v4994_v26 = vcombine.low %v2392_v62, %v2400_v63  ;;  %v4996_v11 = vcombine.low %v2393_v0, %v2401_v1  ;;  %v2426_v55 = vld [vmem:[%s5926_s27 + $0x130] sm:$0xff]  ;;  %v2427_v57 = vld [vmem:[%s5926_s27 + $0x138] sm:$0xff] }
 0xc74   : > { %v2341_v20 = vadd.f32 %v5781_v19, %v2339_v43  ;;  %v2346_v21 = vadd.f32 %v2345_v34, %v2340_v17  ;;  %2865 = vmatprep.subr.bf16.mxu0 %v5035_v5  ;;  %v4997_v5 = vcombine.high %v2393_v0, %v2401_v1  ;;  %v2434_v56 = vld [vmem:[%s5926_s27 + $0x170] sm:$0xff]  ;;  %v2435_v58 = vld [vmem:[%s5926_s27 + $0x178] sm:$0xff] }
 0xc75   : > { %2866 = vmatpush1.bf16.msra.mxu0 %v5034_v8  ;;  %v2416_v8 = vld [vmem:[%s5926_s27 + $0xe0] sm:$0xff]  ;;  %v2442_v62 = vld [vmem:[%s5926_s27 + $0x1b0] sm:$0xff]  ;;  %v2443_v0 = vld [vmem:[%s5926_s27 + $0x1b8] sm:$0xff] }
 0xc76   : > { %v2348_v22 = vsel %vm761_vm2, %v2346_v21, 0.0  ;;  %v2347_v23 = vadd.f32 %v2345_v34, %v2341_v20  ;;  %v2399_v34 = vld [vmem:[%s5926_s27 + $0x58] sm:$0xff]  ;;  %2945 = vmatprep.subr.bf16.mxu0 %v4991_v14  ;;  %v2424_v14 = vld [vmem:[%s5926_s27 + $0x120] sm:$0xff]  ;;  %v2450_v63 = vld [vmem:[%s5926_s27 + $0x1f0] sm:$0xff] }
 0xc77   : > { %2349 = vadd.xlane.f32.xlu0 %v2348_v22  ;;  %v4992_v15 = vcombine.low %v2391_v12, %v2399_v34  ;;  %v4993_v7 = vcombine.high %v2391_v12, %v2399_v34  ;;  %v5011_v12 = vcombine.high %v2408_v6, %v2416_v8  ;;  %v2432_v34 = vld [vmem:[%s5926_s27 + $0x160] sm:$0xff]  ;;  %v2451_v1 = vld [vmem:[%s5926_s27 + $0x1f8] sm:$0xff] }
 0xc78   : > { %v2351_v24 = vsel %vm761_vm2, %v2347_v23, 0.0 }
 0xc79   : > { %2352 = vadd.xlane.f32.xlu1 %v2351_v24  ;;  %2988 = vmatprep.subr.bf16.mxu1 %v4993_v7  ;;  %v6180_v24 = vsub.s32 2, %v5969_v28  ;;  %v2433_v7 = vld [vmem:[%s5926_s27 + $0x168] sm:$0xff] }
 0xd04   : > { %v2350_v25 = vpop.xlane.xlu0 %2349 }
 0xd05   : > { %v2355_v27 = vmul.f32 0.015625, %v2350_v25 }
 0xd06   : > { %v2353_v30 = vpop.xlane.xlu1 %2352 }
 0xd07   : > { %v6147_v31 = vsub.f32 %v2346_v21, %v2355_v27  ;;  %v2356_v33 = vmul.f32 0.015625, %v2353_v30  ;;  %v2384_v30 = vrot.slane %v6141_v40, %v6180_v24 }
 0xd09   : > { %v6149_v35 = vsub.f32 %v2347_v23, %v2356_v33  ;;  %v2359_v36 = vmul.f32 %v6147_v31, %v6147_v31  ;;  %v2378_v23 = vrot.slane %v6141_v40, %v5981_v32  ;;  %v5009_v40 = vcombine.high %v2407_v42, %v2415_v44 }
 0xd0b   : > { %v2361_v37 = vsel %vm761_vm2, %v2359_v36, 0.0  ;;  %v2360_v38 = vmul.f32 %v6149_v35, %v6149_v35 }
 0xd0c   : > { %2362 = vadd.xlane.f32.xlu0 %v2361_v37 }
 0xd0d   : > { %v2364_v41 = vsel %vm761_vm2, %v2360_v38, 0.0  ;;  %v2406_v38 = vld [vmem:[%s5926_s27 + $0x90] sm:$0xff] }
 0xd10   : > { %2365 = vadd.xlane.f32.xlu0 %v2364_v41  ;;  %v2414_v41 = vld [vmem:[%s5926_s27 + $0xd0] sm:$0xff] }
 0xd11   : > { %v5007_v47 = vcombine.high %v2406_v38, %v2414_v41  ;;  %v5006_v51 = vcombine.low %v2406_v38, %v2414_v41  ;;  %v2395_v38 = vld [vmem:[%s5926_s27 + $0x38] sm:$0xff] }
 0xd12   : > { %v2403_v41 = vld [vmem:[%s5926_s27 + $0x78] sm:$0xff] }
 0xd99   : > { %v2363_v17 = vpop.xlane.xlu0 %2362 }
 0xd9a   : > { %v2367_v43 = vmul.f32 0.015625, %v2363_v17  ;;  %v5010_v17 = vcombine.low %v2408_v6, %v2416_v8  ;;  %v5046_v6 = vcombine.low %v2442_v62, %v2450_v63  ;;  %v5048_v8 = vcombine.low %v2443_v0, %v2451_v1 }
 0xd9c   : > { %v2369_v18 = vadd.f32 1e-05, %v2367_v43  ;;  %v5012_v43 = vcombine.low %v2409_v9, %v2417_v10 }
 0xd9d   : > { %v2366_v19 = vpop.xlane.xlu0 %2365 }
 0xd9e   : > { %5772 = vrsqrt.f32 %v2369_v18  ;;  %v2368_v20 = vmul.f32 0.015625, %v2366_v19  ;;  %v5027_v18 = vcombine.high %v2424_v14, %v2432_v34 }
 0xda0   : > { %v2370_v21 = vadd.f32 1e-05, %v2368_v20  ;;  %v2440_v20 = vld [vmem:[%s5926_s27 + $0x1a0] sm:$0xff] }
 0xda2   : > { %5774 = vrsqrt.f32 %v2370_v21  ;;  %v2448_v21 = vld [vmem:[%s5926_s27 + $0x1e0] sm:$0xff] }
 0xda3   : > { %v5042_v42 = vcombine.low %v2440_v20, %v2448_v21 }
 0xda8   : > { %v5773_v22 = vpop.eup %5772 }
 0xda9   : > { %v2373_v25 = vmul.f32 %v5773_v22, %v6147_v31  ;;  %v2441_v22 = vld [vmem:[%s5926_s27 + $0x1a8] sm:$0xff] }
 0xdab   : > { %v2379_v33 = vmul.f32 %v2378_v23, %v2373_v25  ;;  %v5026_v25 = vcombine.low %v2424_v14, %v2432_v34  ;;  %v5619_v14 = vld [vmem:[%s5936_s6 + $0x88] sm:$0xff]   ;;  %v5620_v34 = vld [vmem:[%s5936_s6 + $0x50] sm:$0xff]  }
 0xdac   : > { %v5775_v27 = vpop.eup %5774 }
 0xdad   : > { %v2374_v36 = vmul.f32 %v5775_v27, %v6149_v35  ;;  %v6190_v45 = vadd.f32 %v2384_v30, %v2379_v33  ;;  %v2430_v35 = vld [vmem:[%s5926_s27 + $0x150] sm:$0xff] }
 0xdae   : > { %v5023_v53 = vcombine.high %v2422_v48, %v2430_v35  ;;  %v5022_v59 = vcombine.low %v2422_v48, %v2430_v35  ;;  %v2410_v48 = vld [vmem:[%s5926_s27 + $0xb0] sm:$0xff] }
 0xdaf   : > { %v2380_v37 = vmul.f32 %v2378_v23, %v2374_v36  ;;  %v2449_v23 = vld [vmem:[%s5926_s27 + $0x1e8] sm:$0xff]  ;;  %v2394_v36 = vld [vmem:[%s5926_s27 + $0x30] sm:$0xff] }
 0xdb0   : > { %v5045_v33 = vcombine.high %v2441_v22, %v2449_v23  ;;  %v5044_v44 = vcombine.low %v2441_v22, %v2449_v23  ;;  %v2418_v35 = vld [vmem:[%s5926_s27 + $0xf0] sm:$0xff]  ;;  %v5630_v22 = vld [vmem:[%s5936_s6 + $0x20] sm:$0xff]  }
 0xdb1   : > { %v6192_v46 = vadd.f32 %v2384_v30, %v2380_v37  ;;  %v5043_v30 = vcombine.high %v2440_v20, %v2448_v21  ;;  %v2402_v37 = vld [vmem:[%s5926_s27 + $0x70] sm:$0xff]  ;;  %v5628_v20 = vld [vmem:[%s5936_s6 + $0x60] sm:$0xff]  }
 0xdb2   : > { %v5629_v21 = vld [vmem:[%s5936_s6 + $0xe0] sm:$0xff]  }
 0xdb3   : > { %v6196_v31 = vpack.c.bf16 %v6192_v46, %v6190_v45  ;;  %v5631_v23 = vld [vmem:[%s5936_s6 + $0xa0] sm:$0xff]  }
 0xdb5   : > { %5050 = vmatmul.mubr.msk.bf16.vlgmr.msra.gmra.mrb[24].mxu0 %vm761_vm2, %v6196_v31  ;;  %5051 = vmatmul.mubr.msk.bf16.vlgmr.msra.gmra.mrb[32].mxu1 %vm761_vm2, %v6196_v31 }
 0xdb6   : > { %2946 = vmatpush1.bf16.msra.mxu0 %v4990_v13  ;;  %2989 = vmatpush1.bf16.msra.mxu1 %v4992_v15  ;;  %v5013_v13 = vcombine.high %v2409_v9, %v2417_v10  ;;  %v2425_v15 = vld [vmem:[%s5926_s27 + $0x128] sm:$0xff]  ;;  %v5613_v9 = vld [vmem:[%s5936_s6 + $0xc0] sm:$0xff]  }
 0xdb7   : > { %2947 = vmatprep.subr.bf16.mxu0 %v5007_v47  ;;  %2990 = vmatprep.subr.bf16.mxu1 %v5009_v40  ;;  %v5029_v19 = vcombine.high %v2425_v15, %v2433_v7  ;;  %v5028_v27 = vcombine.low %v2425_v15, %v2433_v7  ;;  %v4999_v47 = vcombine.high %v2394_v36, %v2402_v37  ;;  %v5614_v10 = vld [vmem:[%s5936_s6] sm:$0xff]   ;;  %v5621_v15 = vld [vmem:[%s5936_s6 + $0xd0] sm:$0xff]  }
 0xdb8   : > { %2977 = vmatprep.mubr.bf16.mxu0 %v5795_v16  ;;  %3020 = vmatprep.mubr.bf16.mxu1 %v5795_v16  ;;  %v5001_v40 = vcombine.high %v2395_v38, %v2403_v41  ;;  %v5622_v7 = vld [vmem:[%s5936_s6 + $0x10] sm:$0xff]  }
 0xdba   : > { %2948 = vmatpush1.bf16.msra.mxu0 %v5006_v51  ;;  %2991 = vmatpush1.bf16.msra.mxu1 %v5008_v52  ;;  %v4998_v51 = vcombine.low %v2394_v36, %v2402_v37  ;;  %v5000_v52 = vcombine.low %v2395_v38, %v2403_v41  ;;  %v5636_v36 = vld [vmem:[%s5936_s6 + $0x70] sm:$0xff]  }
 0xdbb   : > { %2949 = vmatprep.subr.bf16.mxu0 %v5023_v53  ;;  %2992 = vmatprep.subr.bf16.mxu1 %v5025_v54  ;;  %v5015_v53 = vcombine.high %v2410_v48, %v2418_v35  ;;  %v5017_v54 = vcombine.high %v2411_v49, %v2419_v50  ;;  %v5637_v37 = vld [vmem:[%s5936_s6 + $0xf0] sm:$0xff]  }
 0xdbc   : > { %v5638_v38 = vld [vmem:[%s5936_s6 + $0x30] sm:$0xff]  }
 0xdbd   : > { %v5639_v41 = vld [vmem:[%s5936_s6 + $0xb0] sm:$0xff]  }
 0xdbe   : > { %2950 = vmatpush1.bf16.msra.mxu0 %v5022_v59  ;;  %2993 = vmatpush1.bf16.msra.mxu1 %v5024_v60  ;;  %v5014_v59 = vcombine.low %v2410_v48, %v2418_v35  ;;  %v5016_v60 = vcombine.low %v2411_v49, %v2419_v50  ;;  %v5644_v48 = vld [vmem:[%s5936_s6 + $0x140] sm:$0xff]   ;;  %v2482_v49 = vsub.s32 6, %v5969_v28  ;;  %v6296_v50 = vld [vmem:[%s5931_s5 + $0x8] sm:$0xff] }
 0xdbf   : > { %2951 = vmatprep.subr.bf16.mxu0 %v5039_v39  ;;  %2994 = vmatprep.subr.bf16.mxu1 %v5041_v61  ;;  %v5031_v39 = vcombine.high %v2426_v55, %v2434_v56  ;;  %v5033_v61 = vcombine.high %v2427_v57, %v2435_v58  ;;  %v5645_v35 = vld [vmem:[%s5936_s6 + $0x1c0] sm:$0xff]  }
 0xdc2   : > { %2952 = vmatpush1.bf16.msra.mxu0 %v5038_v2  ;;  %2995 = vmatpush1.bf16.msra.mxu1 %v5040_v3  ;;  %v5030_v2 = vcombine.low %v2426_v55, %v2434_v56  ;;  %v5032_v3 = vcombine.low %v2427_v57, %v2435_v58 }
 0xdc3   : > { %3031 = vmatprep.subr.bf16.mxu0 %v4995_v4  ;;  %3074 = vmatprep.subr.bf16.mxu1 %v4997_v5  ;;  %v5047_v4 = vcombine.high %v2442_v62, %v2450_v63  ;;  %v5049_v5 = vcombine.high %v2443_v0, %v2451_v1 }
 0xdc5   : > { %5052 = vmatmul.mubr.msk.bf16.vlgmr.msra.gmra.mrb[28].mxu0 %vm761_vm2, %v6196_v31  ;;  %5053 = vmatmul.mubr.msk.bf16.vlgmr.msra.gmra.mrb[36].mxu1 %vm761_vm2, %v6196_v31 }
 0xdc6   : > { %3032 = vmatpush1.bf16.msra.mxu0 %v4994_v26  ;;  %3075 = vmatpush1.bf16.msra.mxu1 %v4996_v11  ;;  %v5615_v26 = vld [vmem:[%s5936_s6 + $0x80] sm:$0xff]   ;;  %v5616_v11 = vld [vmem:[%s5936_s6 + $0x48] sm:$0xff]  }
 0xdc7   : > { %3033 = vmatprep.subr.bf16.mxu0 %v5011_v12  ;;  %3076 = vmatprep.subr.bf16.mxu1 %v5013_v13  ;;  %v5617_v12 = vld [vmem:[%s5936_s6 + $0xc8] sm:$0xff]  }
 0xdc8   : > { %3063 = vmatprep.mubr.bf16.mxu0 %v5795_v16  ;;  %3106 = vmatprep.mubr.bf16.mxu1 %v5795_v16  ;;  %v5618_v13 = vld [vmem:[%s5936_s6 + $0x8] sm:$0xff]  }
 0xdca   : > { %3034 = vmatpush1.bf16.msra.mxu0 %v5010_v17  ;;  %3077 = vmatpush1.bf16.msra.mxu1 %v5012_v43  ;;  %v5623_v17 = vld [vmem:[%s5936_s6 + $0x90] sm:$0xff]   ;;  %v5625_v43 = vld [vmem:[%s5936_s6 + $0xd8] sm:$0xff]  }
 0xdcb   : > { %3035 = vmatprep.subr.bf16.mxu0 %v5027_v18  ;;  %3078 = vmatprep.subr.bf16.mxu1 %v5029_v19  ;;  %v5626_v18 = vld [vmem:[%s5936_s6 + $0x18] sm:$0xff]  }
 0xdcc   : > { %v5627_v19 = vld [vmem:[%s5936_s6 + $0x98] sm:$0xff]  }
 0xdce   : > { %3036 = vmatpush1.bf16.msra.mxu0 %v5026_v25  ;;  %3079 = vmatpush1.bf16.msra.mxu1 %v5028_v27  ;;  %v5632_v25 = vld [vmem:[%s5936_s6 + $0x68] sm:$0xff]  }
 0xdcf   : > { %3037 = vmatprep.subr.bf16.mxu0 %v5043_v30  ;;  %3080 = vmatprep.subr.bf16.mxu1 %v5045_v33  ;;  %v5633_v27 = vld [vmem:[%s5936_s6 + $0xe8] sm:$0xff]  }
 0xdd0   : > { %v5634_v30 = vld [vmem:[%s5936_s6 + $0x28] sm:$0xff]  }
 0xdd1   : > { %v5635_v33 = vld [vmem:[%s5936_s6 + $0xa8] sm:$0xff]  }
 0xdd2   : > { %3038 = vmatpush1.bf16.msra.mxu0 %v5042_v42  ;;  %3081 = vmatpush1.bf16.msra.mxu1 %v5044_v44  ;;  %v5640_v42 = vld [vmem:[%s5936_s6 + $0x78] sm:$0xff]  }
 0xdd3   : > { %3117 = vmatprep.subr.bf16.mxu0 %v4999_v47  ;;  %3160 = vmatprep.subr.bf16.mxu1 %v5001_v40  ;;  %v5641_v44 = vld [vmem:[%s5936_s6 + $0xf8] sm:$0xff]  }
 0xdd4   : > { %v5642_v47 = vld [vmem:[%s5936_s6 + $0x38] sm:$0xff]  }
 0xdd5   : > { %5054 = vmatmul.mubr.msk.bf16.vlgmr.msra.gmra.mrb[32].mxu0 %vm761_vm2, %v6196_v31  ;;  %5055 = vmatmul.mubr.msk.bf16.vlgmr.msra.gmra.mrb[40].mxu1 %vm761_vm2, %v6196_v31  ;;  %v5643_v40 = vld [vmem:[%s5936_s6 + $0xb8] sm:$0xff]  }
 0xdd6   : > { %3118 = vmatpush1.bf16.msra.mxu0 %v4998_v51  ;;  %3161 = vmatpush1.bf16.msra.mxu1 %v5000_v52  ;;  %v6299_v51 = vrot.slane %v6296_v50, %v2482_v49  ;;  %v2452_v52 = vld [vmem:[%s5931_s5] sm:$0xff]  ;;  %s6528_s5 = sld [smem:[#allocation9_spill]] (!%p5186_p5) }
 0xdd7   : > { %3119 = vmatprep.subr.bf16.mxu0 %v5015_v53  ;;  %3162 = vmatprep.subr.bf16.mxu1 %v5017_v54  ;;  %v6303_v53 = vsub.s32 3, %v5969_v28  ;;  %v2459_v54 = vrot.slane %v2452_v52, %v5976_v29  ;;  %v2467_v55 = vrot.slane %v2452_v52, %v6180_v24  ;;  %v2463_v56 = vrot.slane %v2452_v52, %v5981_v32 }
 0xdd8   : > { %3149 = vmatprep.mubr.bf16.mxu0 %v5795_v16  ;;  %3192 = vmatprep.mubr.bf16.mxu1 %v5795_v16  ;;  %v5612_v16 = vld [vmem:[%s5936_s6 + $0x40] sm:$0xff]  }
 0xdd9   : > { %v2471_v57 = vrot.slane %v2452_v52, %v6303_v53 }
 0xdda   : > { %3120 = vmatpush1.bf16.msra.mxu0 %v5014_v59  ;;  %3163 = vmatpush1.bf16.msra.mxu1 %v5016_v60 }
 0xddb   : > { %3121 = vmatprep.subr.bf16.mxu0 %v5031_v39  ;;  %3164 = vmatprep.subr.bf16.mxu1 %v5033_v61 }
 0xdde   : > { %3122 = vmatpush1.bf16.msra.mxu0 %v5030_v2  ;;  %3165 = vmatpush1.bf16.msra.mxu1 %v5032_v3 }
 0xddf   : > { %3123 = vmatprep.subr.bf16.mxu0 %v5047_v4  ;;  %3166 = vmatprep.subr.bf16.mxu1 %v5049_v5 }
 0xde2   : > { %3124 = vmatpush1.bf16.msra.mxu0 %v5046_v6  ;;  %3167 = vmatpush1.bf16.msra.mxu1 %v5048_v8 }
 0xde3   : > { %5245 = vmatprep.subr.bf16.mxu0 %v5612_v16  ;;  %5267 = vmatprep.subr.bf16.mxu1 %v5613_v9 }
 0xde5   : > { %5056 = vmatmul.mubr.msk.bf16.vlgmr.msra.gmra.mrb[36].mxu0 %vm761_vm2, %v6196_v31  ;;  %5057 = vmatmul.mubr.msk.bf16.vlgmr.msra.gmra.mrb[44].mxu1 %vm761_vm2, %v6196_v31  ;;  %v5624_v31 = vld [vmem:[%s5936_s6 + $0x58] sm:$0xff]  }
 0xde6   : > { %5246 = vmatpush3.bf16.msra.mxu0 %v5614_v10  ;;  %5268 = vmatpush3.bf16.msra.mxu1 %v5615_v26 }
 0xde7   : > { %5247 = vmatprep.subr.bf16.mxu0 %v5616_v11  ;;  %5269 = vmatprep.subr.bf16.mxu1 %v5617_v12 }
 0xdea   : > { %5248 = vmatpush3.bf16.msra.mxu0 %v5618_v13  ;;  %5270 = vmatpush3.bf16.msra.mxu1 %v5619_v14 }
 0xdeb   : > { %5249 = vmatprep.subr.bf16.mxu0 %v5620_v34  ;;  %5271 = vmatprep.subr.bf16.mxu1 %v5621_v15 }
 0xdee   : > { %5250 = vmatpush3.bf16.msra.mxu0 %v5622_v7  ;;  %5272 = vmatpush3.bf16.msra.mxu1 %v5623_v17 }
 0xdef   : > { %5251 = vmatprep.subr.bf16.mxu0 %v5624_v31  ;;  %5273 = vmatprep.subr.bf16.mxu1 %v5625_v43  ;;  %v5646_v43 = vld [vmem:[%s5936_s6 + $0x100] sm:$0xff]  }
 0xdf2   : > { %5252 = vmatpush3.bf16.msra.mxu0 %v5626_v18  ;;  %5274 = vmatpush3.bf16.msra.mxu1 %v5627_v19  ;;  %v5647_v18 = vld [vmem:[%s5936_s6 + $0x180] sm:$0xff]   ;;  %v5648_v19 = vld [vmem:[%s5936_s6 + $0x148] sm:$0xff]  }
 0xdf3   : > { %5253 = vmatprep.subr.bf16.mxu0 %v5628_v20  ;;  %5275 = vmatprep.subr.bf16.mxu1 %v5629_v21  ;;  %v5649_v20 = vld [vmem:[%s5936_s6 + $0x1c8] sm:$0xff]   ;;  %v6314_v21 = vsub.s32 4, %v5969_v28 }
 0xdf6   : > { %5254 = vmatpush3.bf16.msra.mxu0 %v5630_v22  ;;  %5276 = vmatpush3.bf16.msra.mxu1 %v5631_v23  ;;  %v6317_v22 = vsub.s32 5, %v5969_v28  ;;  %v2486_v23 = vsub.s32 7, %v5969_v28 }
 0xdf7   : > { %5255 = vmatprep.subr.bf16.mxu0 %v5632_v25  ;;  %5277 = vmatprep.subr.bf16.mxu1 %v5633_v27  ;;  %v5650_v25 = vld [vmem:[%s5936_s6 + $0x108] sm:$0xff]  }
 0xdf8   : > { %v5651_v27 = vld [vmem:[%s5936_s6 + $0x188] sm:$0xff]  }
 0xdfa   : > { %5256 = vmatpush3.bf16.msra.mxu0 %v5634_v30  ;;  %5278 = vmatpush3.bf16.msra.mxu1 %v5635_v33  ;;  %v2475_v30 = vrot.slane %v2452_v52, %v6314_v21  ;;  %v2483_v33 = vrot.slane %v2452_v52, %v2482_v49  ;;  %v5656_v49 = vld [vmem:[%s5936_s6 + $0x158] sm:$0xff]  }
 0xdfb   : > { %5257 = vmatprep.subr.bf16.mxu0 %v5636_v36  ;;  %5279 = vmatprep.subr.bf16.mxu1 %v5637_v37  ;;  %v5652_v36 = vld [vmem:[%s5936_s6 + $0x150] sm:$0xff]  }
 0xdfc   : > { %v5653_v37 = vld [vmem:[%s5936_s6 + $0x1d0] sm:$0xff]  }
 0xdfe   : > { %5258 = vmatpush3.bf16.msra.mxu0 %v5638_v38  ;;  %5280 = vmatpush3.bf16.msra.mxu1 %v5639_v41  ;;  %v2479_v38 = vrot.slane %v2452_v52, %v6317_v22  ;;  %v2487_v41 = vrot.slane %v2452_v52, %v2486_v23 }
 0xdff   : > { %5259 = vmatprep.subr.bf16.mxu0 %v5640_v42  ;;  %5281 = vmatprep.subr.bf16.mxu1 %v5641_v44 }
 0xe02   : > { %5260 = vmatpush3.bf16.msra.mxu0 %v5642_v47  ;;  %5282 = vmatpush3.bf16.msra.mxu1 %v5643_v40  ;;  %v5654_v47 = vld [vmem:[%s5936_s6 + $0x110] sm:$0xff]  }
 0xe03   : > { %5289 = vmatprep.subr.bf16.mxu0 %v5644_v48  ;;  %5311 = vmatprep.subr.bf16.mxu1 %v5645_v35  ;;  %v5655_v40 = vld [vmem:[%s5936_s6 + $0x190] sm:$0xff]  }
 0xe88   : > { %v2893_v58 = vpop.f32.mrb[24].mxu0  ;;  %v2936_v59 = vpop.f32.mrb[32].mxu1 }
 0xe89   : > { %v2894_v60 = vadd.f32 %v2893_v58, %v2459_v54  ;;  %v2937_v39 = vadd.f32 %v2936_v59, %v2467_v55  ;;  %v2895_v61 = vpop.f32.mrb[25].mxu0  ;;  %v2938_v62 = vpop.f32.mrb[33].mxu1 }
 0xe8a   : > { %v2896_v63 = vadd.f32 %v2895_v61, %v2463_v56  ;;  %v2939_v0 = vadd.f32 %v2938_v62, %v2471_v57  ;;  %v2897_v1 = vpop.f32.mrb[26].mxu0  ;;  %v2940_v2 = vpop.f32.mrb[34].mxu1 }
 0xe8b   : > { %v2898_v3 = vadd.f32 %v2897_v1, %v2459_v54  ;;  %v2941_v4 = vadd.f32 %v2940_v2, %v2467_v55  ;;  %v2899_v5 = vpop.f32.mrb[27].mxu0  ;;  %v2942_v6 = vpop.f32.mrb[35].mxu1  ;;  %v3203_v9 = vmax.f32 %v2894_v60, 0.0  ;;  %v3205_v10 = vmax.f32 %v2937_v39, 0.0  ;;  %v5658_v1 = vld [vmem:[%s5936_s6 + $0x118] sm:$0xff]  }
 0xe8c   : > { %v2900_v8 = vadd.f32 %v2899_v5, %v2463_v56  ;;  %v2943_v16 = vadd.f32 %v2942_v6, %v2471_v57  ;;  %v3204_v12 = vmax.f32 %v2896_v63, 0.0  ;;  %v3206_v13 = vmax.f32 %v2939_v0, 0.0  ;;  %v5657_v56 = vld [vmem:[%s5936_s6 + $0x1d8] sm:$0xff]  }
 0xe8d   : > { %v3219_v26 = vmax.f32 %v2898_v3, 0.0  ;;  %v3221_v11 = vmax.f32 %v2941_v4, 0.0  ;;  %v5659_v2 = vld [vmem:[%s5936_s6 + $0x198] sm:$0xff]  }
 0xe8e   : > { %v3220_v14 = vmax.f32 %v2900_v8, 0.0  ;;  %v3222_v34 = vmax.f32 %v2943_v16, 0.0  ;;  %v5660_v8 = vld [vmem:[%s5936_s6 + $0x160] sm:$0xff]  }
 0xe8f   : > { %v3235_v15 = vpack.c.bf16 %v3219_v26, %v3203_v9  ;;  %v3237_v7 = vpack.c.bf16 %v3221_v11, %v3205_v10  ;;  %v5661_v16 = vld [vmem:[%s5936_s6 + $0x1e0] sm:$0xff]  }
 0xe90   : > { %v3236_v17 = vpack.c.bf16 %v3220_v14, %v3204_v12  ;;  %v3238_v31 = vpack.c.bf16 %v3222_v34, %v3206_v13 }
 0xe92   : > { %4311 = vmatprep.mubr.bf16.mxu0 %v3236_v17  ;;  %4352 = vmatprep.mubr.bf16.mxu1 %v3238_v31  ;;  %v5664_v17 = vld [vmem:[%s5936_s6 + $0x168] sm:$0xff]  }
 0xe93   : > { %4312 = vmatmul.mubr.bf16.vlgmr.msra.gmra.mrb[40].mxu0 %v3235_v15  ;;  %4353 = vmatmul.mubr.bf16.vlgmr.msra.gmra.mrb[48].mxu1 %v3237_v7  ;;  %v5662_v15 = vld [vmem:[%s5936_s6 + $0x120] sm:$0xff]   ;;  %v5665_v31 = vld [vmem:[%s5936_s6 + $0x1e8] sm:$0xff]  }
 0xe94   : > { %5290 = vmatpush3.bf16.msra.mxu0 %v5646_v43  ;;  %5312 = vmatpush3.bf16.msra.mxu1 %v5647_v18  ;;  %v5663_v7 = vld [vmem:[%s5936_s6 + $0x1a0] sm:$0xff]   ;;  %v5666_v43 = vld [vmem:[%s5936_s6 + $0x128] sm:$0xff]  }
 0xe95   : > { %5291 = vmatprep.subr.bf16.mxu0 %v5648_v19  ;;  %5313 = vmatprep.subr.bf16.mxu1 %v5649_v20  ;;  %v5667_v18 = vld [vmem:[%s5936_s6 + $0x1a8] sm:$0xff]   ;;  %v2491_v19 = vrot.slane %v6296_v50, %v5976_v29  ;;  %v2499_v20 = vrot.slane %v6296_v50, %v6180_v24 }
 0xe98   : > { %v2979_v42 = vpop.f32.mrb[28].mxu0  ;;  %v3022_v44 = vpop.f32.mrb[36].mxu1  ;;  %5292 = vmatpush3.bf16.msra.mxu0 %v5650_v25  ;;  %5314 = vmatpush3.bf16.msra.mxu1 %v5651_v27  ;;  %v5668_v25 = vld [vmem:[%s5936_s6 + $0x170] sm:$0xff]  }
 0xe99   : > { %v2980_v48 = vadd.f32 %v2979_v42, %v2475_v30  ;;  %v3023_v35 = vadd.f32 %v3022_v44, %v2483_v33  ;;  %v2981_v54 = vpop.f32.mrb[29].mxu0  ;;  %v3024_v55 = vpop.f32.mrb[37].mxu1  ;;  %5293 = vmatprep.subr.bf16.mxu0 %v5652_v36  ;;  %5315 = vmatprep.subr.bf16.mxu1 %v5653_v37  ;;  %v5669_v27 = vld [vmem:[%s5936_s6 + $0x1f0] sm:$0xff]  }
 0xe9a   : > { %v2982_v57 = vadd.f32 %v2981_v54, %v2479_v38  ;;  %v3025_v58 = vadd.f32 %v3024_v55, %v2487_v41  ;;  %v2983_v59 = vpop.f32.mrb[30].mxu0  ;;  %v3026_v52 = vpop.f32.mrb[38].mxu1 }
 0xe9b   : > { %v2984_v60 = vadd.f32 %v2983_v59, %v2475_v30  ;;  %v3027_v39 = vadd.f32 %v3026_v52, %v2483_v33  ;;  %v2985_v61 = vpop.f32.mrb[31].mxu0  ;;  %v3028_v62 = vpop.f32.mrb[39].mxu1  ;;  %v3207_v3 = vmax.f32 %v2980_v48, 0.0  ;;  %v3209_v4 = vmax.f32 %v3023_v35, 0.0  ;;  %v5674_v52 = vld [vmem:[%s5936_s6 + $0x138] sm:$0xff]  }
 0xe9c   : > { %v2986_v63 = vadd.f32 %v2985_v61, %v2479_v38  ;;  %v3029_v0 = vadd.f32 %v3028_v62, %v2487_v41  ;;  %5294 = vmatpush3.bf16.msra.mxu0 %v5654_v47  ;;  %5316 = vmatpush3.bf16.msra.mxu1 %v5655_v40  ;;  %v3208_v9 = vmax.f32 %v2982_v57, 0.0  ;;  %v3210_v10 = vmax.f32 %v3025_v58, 0.0  ;;  %v5670_v38 = vld [vmem:[%s5936_s6 + $0x130] sm:$0xff]   ;;  %v5672_v47 = vld [vmem:[%s5936_s6 + $0x178] sm:$0xff]  }
 0xe9d   : > { %v3223_v5 = vmax.f32 %v2984_v60, 0.0  ;;  %v3225_v6 = vmax.f32 %v3027_v39, 0.0  ;;  %5295 = vmatprep.subr.bf16.mxu0 %v5656_v49  ;;  %5317 = vmatprep.subr.bf16.mxu1 %v5657_v56  ;;  %v2495_v30 = vrot.slane %v6296_v50, %v5981_v32  ;;  %v2503_v33 = vrot.slane %v6296_v50, %v6303_v53  ;;  %v5671_v41 = vld [vmem:[%s5936_s6 + $0x1b0] sm:$0xff]   ;;  %v5673_v40 = vld [vmem:[%s5936_s6 + $0x1f8] sm:$0xff]  }
 0xe9e   : > { %v3224_v26 = vmax.f32 %v2986_v63, 0.0  ;;  %v3226_v11 = vmax.f32 %v3029_v0, 0.0  ;;  %v5675_v60 = vld [vmem:[%s5936_s6 + $0x1b8] sm:$0xff]   ;;  %v5676_v0 = vld [vmem:[%s5936_s6 + $0x240] sm:$0xff]  }
 0xe9f   : > { %v6336_v12 = vpack.c.bf16 %v3223_v5, %v3207_v3  ;;  %v6338_v13 = vpack.c.bf16 %v3225_v6, %v3209_v4 }
 0xea0   : > { %v3240_v14 = vpack.c.bf16 %v3224_v26, %v3208_v9  ;;  %v3242_v34 = vpack.c.bf16 %v3226_v11, %v3210_v10  ;;  %5296 = vmatpush3.bf16.msra.mxu0 %v5658_v1  ;;  %5318 = vmatpush3.bf16.msra.mxu1 %v5659_v2  ;;  %v5677_v1 = vld [vmem:[%s5936_s6 + $0x2c0] sm:$0xff]   ;;  %v5680_v11 = vld [vmem:[%s5936_s6 + $0x248] sm:$0xff]  }
 0xea1   : > { %5297 = vmatprep.subr.bf16.mxu0 %v5660_v8  ;;  %5319 = vmatprep.subr.bf16.mxu1 %v5661_v16  ;;  %v5678_v10 = vld [vmem:[%s5936_s6 + $0x200] sm:$0xff]  }
 0xea2   : > { %4393 = vmatprep.mubr.bf16.mxu0 %v3240_v14  ;;  %4434 = vmatprep.mubr.bf16.mxu1 %v3242_v34  ;;  %v5679_v26 = vld [vmem:[%s5936_s6 + $0x280] sm:$0xff]   ;;  %v5681_v14 = vld [vmem:[%s5936_s6 + $0x2c8] sm:$0xff]  }
 0xea3   : > { %v5682_v34 = vld [vmem:[%s5936_s6 + $0x208] sm:$0xff]  }
 0xea4   : > { %5298 = vmatpush3.bf16.msra.mxu0 %v5662_v15  ;;  %5320 = vmatpush3.bf16.msra.mxu1 %v5663_v7  ;;  %v2507_v15 = vrot.slane %v6296_v50, %v6314_v21  ;;  %v5683_v7 = vld [vmem:[%s5936_s6 + $0x288] sm:$0xff]  }
 0xea5   : > { %5299 = vmatprep.subr.bf16.mxu0 %v5664_v17  ;;  %5321 = vmatprep.subr.bf16.mxu1 %v5665_v31  ;;  %v5684_v17 = vld [vmem:[%s5936_s6 + $0x250] sm:$0xff]  }
 0xea6   : > { %v5685_v31 = vld [vmem:[%s5936_s6 + $0x2d0] sm:$0xff]  }
 0xea8   : > { %v3065_v36 = vpop.f32.mrb[32].mxu0  ;;  %v3108_v37 = vpop.f32.mrb[40].mxu1  ;;  %5300 = vmatpush3.bf16.msra.mxu0 %v5666_v43  ;;  %5322 = vmatpush3.bf16.msra.mxu1 %v5667_v18 }
 0xea9   : > { %v3066_v29 = vadd.f32 %v3065_v36, %v2491_v19  ;;  %v3109_v42 = vadd.f32 %v3108_v37, %v2499_v20  ;;  %v3067_v44 = vpop.f32.mrb[33].mxu0  ;;  %v3110_v24 = vpop.f32.mrb[41].mxu1  ;;  %5301 = vmatprep.subr.bf16.mxu0 %v5668_v25  ;;  %5323 = vmatprep.subr.bf16.mxu1 %v5669_v27  ;;  %v5688_v36 = vld [vmem:[%s5936_s6 + $0x258] sm:$0xff]  }
 0xeaa   : > { %v3068_v32 = vadd.f32 %v3067_v44, %v2495_v30  ;;  %v3111_v48 = vadd.f32 %v3110_v24, %v2503_v33  ;;  %v3069_v35 = vpop.f32.mrb[34].mxu0  ;;  %v3112_v54 = vpop.f32.mrb[42].mxu1 }
 0xeab   : > { %v3070_v55 = vadd.f32 %v3069_v35, %v2491_v19  ;;  %v3113_v49 = vadd.f32 %v3112_v54, %v2499_v20  ;;  %v3071_v56 = vpop.f32.mrb[35].mxu0  ;;  %v3114_v57 = vpop.f32.mrb[43].mxu1  ;;  %v3211_v39 = vmax.f32 %v3066_v29, 0.0  ;;  %v3213_v61 = vmax.f32 %v3109_v42, 0.0  ;;  %v5686_v19 = vld [vmem:[%s5936_s6 + $0x210] sm:$0xff]  }
 0xeac   : > { %v3072_v58 = vadd.f32 %v3071_v56, %v2495_v30  ;;  %v3115_v59 = vadd.f32 %v3114_v57, %v2503_v33  ;;  %5302 = vmatpush3.bf16.msra.mxu0 %v5670_v38  ;;  %5324 = vmatpush3.bf16.msra.mxu1 %v5671_v41  ;;  %v3212_v2 = vmax.f32 %v3068_v32, 0.0  ;;  %v3214_v3 = vmax.f32 %v3111_v48, 0.0  ;;  %v5687_v33 = vld [vmem:[%s5936_s6 + $0x290] sm:$0xff]  }
 0xead   : > { %v3227_v62 = vmax.f32 %v3070_v55, 0.0  ;;  %v3229_v63 = vmax.f32 %v3113_v49, 0.0  ;;  %5303 = vmatprep.subr.bf16.mxu0 %v5672_v47  ;;  %5325 = vmatprep.subr.bf16.mxu1 %v5673_v40  ;;  %v5690_v40 = vld [vmem:[%s5936_s6 + $0x218] sm:$0xff]   ;;  %v5692_v49 = vld [vmem:[%s5936_s6 + $0x260] sm:$0xff]  }
 0xeae   : > { %v3228_v4 = vmax.f32 %v3072_v58, 0.0  ;;  %v3230_v5 = vmax.f32 %v3115_v59, 0.0  ;;  %v5691_v55 = vld [vmem:[%s5936_s6 + $0x298] sm:$0xff]   ;;  %v5693_v59 = vld [vmem:[%s5936_s6 + $0x2e0] sm:$0xff]  }
 0xeaf   : > { %v6364_v6 = vpack.c.bf16 %v3227_v62, %v3211_v39  ;;  %v6366_v8 = vpack.c.bf16 %v3229_v63, %v3213_v61  ;;  %v5694_v62 = vld [vmem:[%s5936_s6 + $0x220] sm:$0xff]  }
 0xeb0   : > { %v3244_v16 = vpack.c.bf16 %v3228_v4, %v3212_v2  ;;  %v3246_v9 = vpack.c.bf16 %v3230_v5, %v3214_v3  ;;  %5304 = vmatpush3.bf16.msra.mxu0 %v5674_v52  ;;  %5326 = vmatpush3.bf16.msra.mxu1 %v5675_v60  ;;  %v5695_v63 = vld [vmem:[%s5936_s6 + $0x2a0] sm:$0xff]   ;;  %v5698_v2 = vld [vmem:[%s5936_s6 + $0x228] sm:$0xff]   ;;  %v5700_v4 = vld [vmem:[%s5936_s6 + $0x270] sm:$0xff]  }
 0xeb1   : > { %5333 = vmatprep.subr.bf16.mxu0 %v5676_v0  ;;  %5355 = vmatprep.subr.bf16.mxu1 %v5677_v1  ;;  %v5696_v0 = vld [vmem:[%s5936_s6 + $0x268] sm:$0xff]   ;;  %v5701_v5 = vld [vmem:[%s5936_s6 + $0x2f0] sm:$0xff]  }
 0xeb2   : > { %v5697_v1 = vld [vmem:[%s5936_s6 + $0x2e8] sm:$0xff]  }
 0xeb3   : > { %4394 = vmatmul.mubr.bf16.vlgmr.msra.gmra.mrb[44].mxu0 %v6336_v12  ;;  %4435 = vmatmul.mubr.bf16.vlgmr.msra.gmra.mrb[52].mxu1 %v6338_v13  ;;  %v2511_v12 = vrot.slane %v6296_v50, %v6317_v22  ;;  %v2519_v13 = vrot.slane %v6296_v50, %v2486_v23  ;;  %v5689_v23 = vld [vmem:[%s5936_s6 + $0x2d8] sm:$0xff]   ;;  %v5699_v3 = vld [vmem:[%s5936_s6 + $0x2a8] sm:$0xff]  }
 0xeb4   : > { %5334 = vmatpush3.bf16.msra.mxu0 %v5678_v10  ;;  %4475 = vmatprep.mubr.bf16.mxu0 %v3244_v16  ;;  %v5702_v16 = vld [vmem:[%s5936_s6 + $0x230] sm:$0xff]   ;;  %v5704_v10 = vld [vmem:[%s5936_s6 + $0x278] sm:$0xff]  }
 0xeb5   : > { %5356 = vmatpush3.bf16.msra.mxu1 %v5679_v26  ;;  %4516 = vmatprep.mubr.bf16.mxu1 %v3246_v9  ;;  %v5703_v9 = vld [vmem:[%s5936_s6 + $0x2b0] sm:$0xff]   ;;  %v5705_v26 = vld [vmem:[%s5936_s6 + $0x2f8] sm:$0xff]  }
 0xeb6   : > { %5335 = vmatprep.subr.bf16.mxu0 %v5680_v11  ;;  %5357 = vmatprep.subr.bf16.mxu1 %v5681_v14  ;;  %v5706_v11 = vld [vmem:[%s5936_s6 + $0x238] sm:$0xff]  }
 0xeb7   : > { %v5707_v14 = vld [vmem:[%s5936_s6 + $0x2b8] sm:$0xff]  }
 0xeb8   : > { %v3151_v43 = vpop.f32.mrb[36].mxu0  ;;  %v3194_v18 = vpop.f32.mrb[44].mxu1  ;;  %5336 = vmatpush3.bf16.msra.mxu0 %v5682_v34  ;;  %v5708_v34 = vld [vmem:[%s5936_s6 + $0x340] sm:$0xff]  }
 0xeb9   : > { %v3152_v20 = vadd.f32 %v3151_v43, %v2507_v15  ;;  %v3195_v25 = vadd.f32 %v3194_v18, %v6299_v51  ;;  %5358 = vmatpush3.bf16.msra.mxu1 %v5683_v7  ;;  %v3153_v27 = vpop.f32.mrb[37].mxu0  ;;  %v3196_v30 = vpop.f32.mrb[45].mxu1  ;;  %5337 = vmatprep.subr.bf16.mxu0 %v5684_v17  ;;  %v5710_v7 = vld [vmem:[%s5936_s6 + $0x300] sm:$0xff]   ;;  %v5715_v43 = vld [vmem:[%s5936_s6 + $0x388] sm:$0xff]   ;;  %v5716_v18 = vld [vmem:[%s5936_s6 + $0x350] sm:$0xff]  }
 0xeba   : > { %v3154_v37 = vadd.f32 %v3153_v27, %v2511_v12  ;;  %v3197_v28 = vadd.f32 %v3196_v30, %v2519_v13  ;;  %v3155_v38 = vpop.f32.mrb[38].mxu0  ;;  %v3198_v50 = vpop.f32.mrb[46].mxu1  ;;  %5359 = vmatprep.subr.bf16.mxu1 %v5685_v31  ;;  %v5711_v17 = vld [vmem:[%s5936_s6 + $0x380] sm:$0xff]   ;;  %v5714_v31 = vld [vmem:[%s5936_s6 + $0x308] sm:$0xff]   ;;  %v5722_v27 = vld [vmem:[%s5936_s6 + $0x318] sm:$0xff]  }
 0xebb   : > { %v3156_v41 = vadd.f32 %v3155_v38, %v2507_v15  ;;  %v3199_v29 = vadd.f32 %v3198_v50, %v6299_v51  ;;  %v3157_v42 = vpop.f32.mrb[39].mxu0  ;;  %v3200_v44 = vpop.f32.mrb[47].mxu1  ;;  %v3215_v32 = vmax.f32 %v3152_v20, 0.0  ;;  %v3217_v48 = vmax.f32 %v3195_v25, 0.0  ;;  %v5709_v15 = vld [vmem:[%s5936_s6 + $0x3c0] sm:$0xff]   ;;  %v5720_v20 = vld [vmem:[%s5936_s6 + $0x358] sm:$0xff]  }
 0xebc   : > { %v3158_v24 = vadd.f32 %v3157_v42, %v2511_v12  ;;  %v3201_v47 = vadd.f32 %v3200_v44, %v2519_v13  ;;  %5338 = vmatpush3.bf16.msra.mxu0 %v5686_v19  ;;  %v3216_v56 = vmax.f32 %v3154_v37, 0.0  ;;  %v3218_v51 = vmax.f32 %v3197_v28, 0.0  ;;  %v5712_v12 = vld [vmem:[%s5936_s6 + $0x348] sm:$0xff]   ;;  %v5717_v19 = vld [vmem:[%s5936_s6 + $0x3d0] sm:$0xff]   ;;  %v5721_v25 = vld [vmem:[%s5936_s6 + $0x3d8] sm:$0xff]  }
 0xebd   : > { %v3231_v35 = vmax.f32 %v3156_v41, 0.0  ;;  %v3233_v54 = vmax.f32 %v3199_v29, 0.0  ;;  %5360 = vmatpush3.bf16.msra.mxu1 %v5687_v33  ;;  %5339 = vmatprep.subr.bf16.mxu0 %v5688_v36  ;;  %v5713_v13 = vld [vmem:[%s5936_s6 + $0x3c8] sm:$0xff]   ;;  %v5723_v30 = vld [vmem:[%s5936_s6 + $0x398] sm:$0xff]   ;;  %v5724_v33 = vld [vmem:[%s5936_s6 + $0x360] sm:$0xff]  }
 0xebe   : > { %v3232_v57 = vmax.f32 %v3158_v24, 0.0  ;;  %v3234_v58 = vmax.f32 %v3201_v47, 0.0  ;;  %5361 = vmatprep.subr.bf16.mxu1 %v5689_v23  ;;  %v5725_v36 = vld [vmem:[%s5936_s6 + $0x3e0] sm:$0xff]   ;;  %v5728_v38 = vld [vmem:[%s5936_s6 + $0x368] sm:$0xff]   ;;  %v5732_v29 = vld [vmem:[%s5936_s6 + $0x370] sm:$0xff]  }
 0xebf   : > { %v6395_v52 = vpack.c.bf16 %v3231_v35, %v3215_v32  ;;  %v6397_v60 = vpack.c.bf16 %v3233_v54, %v3217_v48  ;;  %v5726_v37 = vld [vmem:[%s5936_s6 + $0x320] sm:$0xff]   ;;  %v5729_v50 = vld [vmem:[%s5936_s6 + $0x3e8] sm:$0xff]   ;;  %v5733_v42 = vld [vmem:[%s5936_s6 + $0x3f0] sm:$0xff]  }
 0xec0   : > { %v3248_v39 = vpack.c.bf16 %v3232_v57, %v3216_v56  ;;  %v3250_v61 = vpack.c.bf16 %v3234_v58, %v3218_v51  ;;  %5340 = vmatpush3.bf16.msra.mxu0 %v5690_v40  ;;  %v5727_v28 = vld [vmem:[%s5936_s6 + $0x3a0] sm:$0xff]   ;;  %v5730_v23 = vld [vmem:[%s5936_s6 + $0x328] sm:$0xff]   ;;  %v5734_v44 = vld [vmem:[%s5936_s6 + $0x330] sm:$0xff]  }
 0xec1   : > { %5362 = vmatpush3.bf16.msra.mxu1 %v5691_v55  ;;  %5341 = vmatprep.subr.bf16.mxu0 %v5692_v49  ;;  %v5731_v41 = vld [vmem:[%s5936_s6 + $0x3a8] sm:$0xff]   ;;  %v5735_v24 = vld [vmem:[%s5936_s6 + $0x3b0] sm:$0xff]   ;;  %v5736_v47 = vld [vmem:[%s5936_s6 + $0x378] sm:$0xff]  }
 0xec2   : > { %5363 = vmatprep.subr.bf16.mxu1 %v5693_v59  ;;  %v5737_v40 = vld [vmem:[%s5936_s6 + $0x3f8] sm:$0xff]   ;;  %v6450_v55 = vld [vmem:[%s5921_s12] sm:$0x3f] }
 0xec3   : > { %v5738_v32 = vld [vmem:[%s5936_s6 + $0x338] sm:$0xff]   ;;  %v3510_v49 = vrot.slane %v6450_v55, %v6303_v53 }
 0xec4   : > { %5342 = vmatpush3.bf16.msra.mxu0 %v5694_v62  ;;  %v5739_v48 = vld [vmem:[%s5936_s6 + $0x3b8] sm:$0xff]  }
 0xec5   : > { %5364 = vmatpush3.bf16.msra.mxu1 %v5695_v63  ;;  %5343 = vmatprep.subr.bf16.mxu0 %v5696_v0 }
 0xec6   : > { %5365 = vmatprep.subr.bf16.mxu1 %v5697_v1 }
 0xec8   : > { %5344 = vmatpush3.bf16.msra.mxu0 %v5698_v2 }
 0xec9   : > { %5366 = vmatpush3.bf16.msra.mxu1 %v5699_v3  ;;  %5345 = vmatprep.subr.bf16.mxu0 %v5700_v4 }
 0xeca   : > { %5367 = vmatprep.subr.bf16.mxu1 %v5701_v5 }
 0xecc   : > { %5346 = vmatpush3.bf16.msra.mxu0 %v5702_v16 }
 0xecd   : > { %5368 = vmatpush3.bf16.msra.mxu1 %v5703_v9  ;;  %5347 = vmatprep.subr.bf16.mxu0 %v5704_v10 }
 0xece   : > { %5369 = vmatprep.subr.bf16.mxu1 %v5705_v26 }
 0xed0   : > { %5348 = vmatpush3.bf16.msra.mxu0 %v5706_v11 }
 0xed1   : > { %5370 = vmatpush3.bf16.msra.mxu1 %v5707_v14  ;;  %5377 = vmatprep.subr.bf16.mxu0 %v5708_v34 }
 0xed2   : > { %5399 = vmatprep.subr.bf16.mxu1 %v5709_v15 }
 0xed3   : > { %4476 = vmatmul.mubr.bf16.vlgmr.msra.gmra.mrb[48].mxu0 %v6364_v6  ;;  %v5718_v6 = vld [vmem:[%s5936_s6 + $0x310] sm:$0xff]  }
 0xed4   : > { %4517 = vmatmul.mubr.bf16.vlgmr.msra.gmra.mrb[56].mxu1 %v6366_v8  ;;  %5378 = vmatpush3.bf16.msra.mxu0 %v5710_v7  ;;  %v5719_v8 = vld [vmem:[%s5936_s6 + $0x390] sm:$0xff]  }
 0xed5   : > { %4557 = vmatprep.mubr.bf16.mxu0 %v3248_v39  ;;  %5400 = vmatpush3.bf16.msra.mxu1 %v5711_v17 }
 0xed6   : > { %4598 = vmatprep.mubr.bf16.mxu1 %v3250_v61  ;;  %5379 = vmatprep.subr.bf16.mxu0 %v5712_v12 }
 0xed7   : > { %5401 = vmatprep.subr.bf16.mxu1 %v5713_v13 }
 0xed8   : > { %5380 = vmatpush3.bf16.msra.mxu0 %v5714_v31 }
 0xed9   : > { %5402 = vmatpush3.bf16.msra.mxu1 %v5715_v43  ;;  %5381 = vmatprep.subr.bf16.mxu0 %v5716_v18 }
 0xeda   : > { %5403 = vmatprep.subr.bf16.mxu1 %v5717_v19 }
 0xedc   : > { %5382 = vmatpush3.bf16.msra.mxu0 %v5718_v6 }
 0xedd   : > { %5404 = vmatpush3.bf16.msra.mxu1 %v5719_v8  ;;  %5383 = vmatprep.subr.bf16.mxu0 %v5720_v20 }
 0xede   : > { %5405 = vmatprep.subr.bf16.mxu1 %v5721_v25 }
 0xee0   : > { %5384 = vmatpush3.bf16.msra.mxu0 %v5722_v27 }
 0xee1   : > { %5406 = vmatpush3.bf16.msra.mxu1 %v5723_v30  ;;  %5385 = vmatprep.subr.bf16.mxu0 %v5724_v33 }
 0xee2   : > { %5407 = vmatprep.subr.bf16.mxu1 %v5725_v36 }
 0xee4   : > { %5386 = vmatpush3.bf16.msra.mxu0 %v5726_v37 }
 0xee5   : > { %5408 = vmatpush3.bf16.msra.mxu1 %v5727_v28  ;;  %5387 = vmatprep.subr.bf16.mxu0 %v5728_v38 }
 0xee6   : > { %5409 = vmatprep.subr.bf16.mxu1 %v5729_v50 }
 0xee8   : > { %5388 = vmatpush3.bf16.msra.mxu0 %v5730_v23 }
 0xee9   : > { %5410 = vmatpush3.bf16.msra.mxu1 %v5731_v41  ;;  %5389 = vmatprep.subr.bf16.mxu0 %v5732_v29 }
 0xeea   : > { %5411 = vmatprep.subr.bf16.mxu1 %v5733_v42 }
 0xeec   : > { %5390 = vmatpush3.bf16.msra.mxu0 %v5734_v44 }
 0xeed   : > { %5412 = vmatpush3.bf16.msra.mxu1 %v5735_v24  ;;  %5391 = vmatprep.subr.bf16.mxu0 %v5736_v47 }
 0xeee   : > { %5413 = vmatprep.subr.bf16.mxu1 %v5737_v40 }
 0xef0   : > { %5392 = vmatpush3.bf16.msra.mxu0 %v5738_v32 }
 0xef1   : > { %5414 = vmatpush3.bf16.msra.mxu1 %v5739_v48 }
 0xef3   : > { %4558 = vmatmul.mubr.bf16.vlgmr.msra.gmra.mrb[52].mxu0 %v6395_v52 }
 0xef4   : > { %4599 = vmatmul.mubr.bf16.vlgmr.msra.gmra.mrb[60].mxu1 %v6397_v60 }
 0xf66   : > { %v5261_v35 = vpop.f32.mrb[40].mxu0  ;;  %v5283_v54 = vpop.f32.mrb[48].mxu1 }
 0xf67   : > { %v5262_v56 = vpop.f32.mrb[41].mxu0  ;;  %v5284_v51 = vpop.f32.mrb[49].mxu1 }
 0xf68   : > { %v5263_v57 = vadd.f32 %v5262_v56, %v5261_v35  ;;  %v5285_v58 = vadd.f32 %v5284_v51, %v5283_v54  ;;  %v5264_v59 = vpop.f32.mrb[42].mxu0  ;;  %v5286_v39 = vpop.f32.mrb[50].mxu1 }
 0xf69   : > { %v5265_v61 = vpop.f32.mrb[43].mxu0  ;;  %v5287_v62 = vpop.f32.mrb[51].mxu1 }
 0xf6a   : > { %v4314_v63 = vadd.f32 %v5263_v57, %v3510_v49  ;;  %v5266_v0 = vadd.f32 %v5265_v61, %v5264_v59  ;;  %v5288_v52 = vadd.f32 %v5287_v62, %v5286_v39 }
 0xf6c   : > { %v4355_v1 = vadd.f32 %v5285_v58, %v4314_v63  ;;  %v4317_v60 = vadd.f32 %v5266_v0, %v3510_v49 }
 0xf6e   : > { %v4358_v2 = vadd.f32 %v5288_v52, %v4317_v60 }
 0xf86   : > { %v5305_v3 = vpop.f32.mrb[44].mxu0  ;;  %v5327_v4 = vpop.f32.mrb[52].mxu1 }
 0xf87   : > { %v5306_v5 = vpop.f32.mrb[45].mxu0  ;;  %v5328_v16 = vpop.f32.mrb[53].mxu1 }
 0xf88   : > { %v5307_v9 = vadd.f32 %v5306_v5, %v5305_v3  ;;  %v5329_v53 = vadd.f32 %v5328_v16, %v5327_v4  ;;  %v5308_v10 = vpop.f32.mrb[46].mxu0  ;;  %v5330_v26 = vpop.f32.mrb[54].mxu1 }
 0xf89   : > { %v5309_v11 = vpop.f32.mrb[47].mxu0  ;;  %v5331_v14 = vpop.f32.mrb[55].mxu1 }
 0xf8a   : > { %v4396_v34 = vadd.f32 %v5307_v9, %v4355_v1  ;;  %v5310_v15 = vadd.f32 %v5309_v11, %v5308_v10  ;;  %v5332_v7 = vadd.f32 %v5331_v14, %v5330_v26  ;;  %v4638_v26 = vrot.slane %v6450_v55, %v6314_v21  ;;  %v5783_v21 = vld [vmem:[%s6512_s11] sm:$0xff] (!%p5186_p5)  }
 0xf8b   : > { %v4644_v14 = vrot.slane %v6450_v55, %v6317_v22  ;;  %v5784_v22 = vld [vmem:[%s6512_s11 + $0x8] sm:$0xff] (!%p5186_p5)   ;;  %v5807_v55 = vmov (!%p5186_p5), 0.0|0.0  }
 0xf8c   : > { %v4437_v17 = vadd.f32 %v5329_v53, %v4396_v34  ;;  %v4399_v12 = vadd.f32 %v5310_v15, %v4358_v2  ;;  %5569 = vmatprep.subr.bf16.mxu1 (!%p5186_p5), %v5807_v55 }
 0xf8e   : > { %v4440_v13 = vadd.f32 %v5332_v7, %v4399_v12 }
 0xfa6   : > { %v5349_v31 = vpop.f32.mrb[48].mxu0 }
 0xfa7   : > { %v5371_v43 = vpop.f32.mrb[56].mxu1  ;;  %v5350_v18 = vpop.f32.mrb[49].mxu0 }
 0xfa8   : > { %v5351_v19 = vadd.f32 %v5350_v18, %v5349_v31  ;;  %v5372_v6 = vpop.f32.mrb[57].mxu1  ;;  %v5352_v8 = vpop.f32.mrb[50].mxu0  ;;  %v4739_v18 = vld [vmem:[%s6514_s13] sm:$0xff] (!%p5186_p5) }
 0xfa9   : > { %v5373_v20 = vadd.f32 %v5372_v6, %v5371_v43  ;;  %v5374_v25 = vpop.f32.mrb[58].mxu1  ;;  %v5353_v27 = vpop.f32.mrb[51].mxu0  ;;  %v5805_v43 = vmov (!%p5186_p5), 0.0  }
 0xfaa   : > { %v4478_v30 = vadd.f32 %v5351_v19, %v4437_v17  ;;  %v5354_v33 = vadd.f32 %v5353_v27, %v5352_v8  ;;  %v5375_v36 = vpop.f32.mrb[59].mxu1  ;;  %5542 = vmatprep.subr.bf16.mxu0 (!%p5186_p5), %v5805_v43  ;;  %5550 = vmatprep.mubr.msk.bf16.mxu0 (!%p5186_p5), %vm5806_vm6, %v5805_v43  ;;  %v4740_v19 = vld [vmem:[%s6514_s13 + $0x8] sm:$0xff] (!%p5186_p5)  ;;  %v5785_v8 = vld [vmem:[%s6512_s11 + $0x10] sm:$0xff] (!%p5186_p5)  }
 0xfab   : > { %v5376_v37 = vadd.f32 %v5375_v36, %v5374_v25  ;;  %5543 = vmatpush3.bf16.msra.mxu0 (!%p5186_p5), %v5783_v21  ;;  %5562 = vmatprep.mubr.msk.f32.mxu1 (!%p5186_p5), %vm5806_vm6, %v5805_v43  ;;  %v5570_v6 = vpack.c.bf16 (!%p5186_p5), %v4740_v19, %v4739_v18 }
 0xfac   : > { %v4519_v28 = vadd.f32 %v5373_v20, %v4478_v30  ;;  %v4481_v38 = vadd.f32 %v5354_v33, %v4440_v13  ;;  %5544 = vmatprep.subr.bf16.mxu0 (!%p5186_p5), %v5805_v43  ;;  %v5786_v20 = vld [vmem:[%s6512_s11 + $0x18] sm:$0xff] (!%p5186_p5)   ;;  %v4741_v30 = vld [vmem:[%s6514_s13 + $0x10] sm:$0xff] (!%p5186_p5) }
 0xfad   : > { %5571 = vmatpush3.bf16.msra.mxu1 (!%p5186_p5), %v5570_v6  ;;  %v4742_v33 = vld [vmem:[%s6514_s13 + $0x18] sm:$0xff] (!%p5186_p5) }
 0xfae   : > { %v4522_v50 = vadd.f32 %v5376_v37, %v4481_v38  ;;  %5572 = vmatprep.subr.bf16.mxu1 (!%p5186_p5), %v5807_v55  ;;  %v5573_v36 = vpack.c.bf16 (!%p5186_p5), %v4742_v33, %v4741_v30  ;;  %v5187_v37 = vld [vmem:[%s6527_s20] ss:$0 sm:$0xff] (!%p5186_p5) }
 0xfaf   : > { %5545 = vmatpush3.bf16.msra.mxu0 (!%p5186_p5), %v5784_v22 }
 0xfb0   : > { %5546 = vmatprep.subr.bf16.mxu0 (!%p5186_p5), %v5805_v43 }
 0xfb1   : > { %5574 = vmatpush3.bf16.msra.mxu1 (!%p5186_p5), %v5573_v36 }
 0xfb3   : > { %5547 = vmatpush3.bf16.msra.mxu0 (!%p5186_p5), %v5785_v8 }
 0xfb4   : > { %5548 = vmatprep.subr.bf16.mxu0 (!%p5186_p5), %v5805_v43 }
 0xfb7   : > { %5549 = vmatpush3.bf16.msra.mxu0 (!%p5186_p5), %v5786_v20 }
 0xfc6   : > { %v5393_v23 = vpop.f32.mrb[52].mxu0 }
 0xfc7   : > { %v5415_v41 = vpop.f32.mrb[60].mxu1  ;;  %v5394_v29 = vpop.f32.mrb[53].mxu0 }
 0xfc8   : > { %v5395_v42 = vadd.f32 %v5394_v29, %v5393_v23  ;;  %v5416_v44 = vpop.f32.mrb[61].mxu1  ;;  %v5396_v24 = vpop.f32.mrb[54].mxu0 }
 0xfc9   : > { %v5417_v47 = vadd.f32 %v5416_v44, %v5415_v41  ;;  %v5418_v40 = vpop.f32.mrb[62].mxu1  ;;  %v5397_v32 = vpop.f32.mrb[55].mxu0 }
 0xfca   : > { %v4560_v48 = vadd.f32 %v5395_v42, %v4519_v28  ;;  %v5398_v35 = vadd.f32 %v5397_v32, %v5396_v24  ;;  %v5419_v54 = vpop.f32.mrb[63].mxu1  ;;  %v5193_v42 = vld [vmem:[#allocation3] ss:$0 sm:$0xff] (!%p5186_p5) }
 0xfcb   : > { %v5420_v49 = vadd.f32 %v5419_v54, %v5418_v40 }
 0xfcc   : > { %v4601_v56 = vadd.f32 %v5417_v47, %v4560_v48  ;;  %v4563_v51 = vadd.f32 %v5398_v35, %v4522_v50 }
 0xfce   : > { %v4604_v57 = vadd.f32 %v5420_v49, %v4563_v51  ;;  %v4607_v58 = vadd.f32 %v4601_v56, %v6190_v45 }
 0xfd0   : > { %v4609_v59 = vsel %vm761_vm2, %v4607_v58, 0.0  ;;  %v4608_v39 = vadd.f32 %v4604_v57, %v6192_v46 }
 0xfd1   : > { %4610 = vadd.xlane.f32.xlu0 %v4609_v59 }
 0xfd2   : > { %v4612_v61 = vsel %vm761_vm2, %v4608_v39, 0.0 }
 0xfd5   : > { %4613 = vadd.xlane.f32.xlu0 %v4612_v61 }
0x105e   : > { %v4611_v62 = vpop.xlane.xlu0 %4610 }
0x105f   : > { %v4615_v63 = vmul.f32 0.015625, %v4611_v62 }
0x1061   : > { %v4617_v0 = vsub.f32 %v4607_v58, %v4615_v63 }
0x1062   : > { %v4614_v52 = vpop.xlane.xlu0 %4613 }
0x1063   : > { %v4616_v1 = vmul.f32 0.015625, %v4614_v52  ;;  %v4619_v60 = vmul.f32 %v4617_v0, %v4617_v0 }
0x1065   : > { %v4618_v2 = vsub.f32 %v4608_v39, %v4616_v1  ;;  %v4621_v3 = vsel %vm761_vm2, %v4619_v60, 0.0 }
0x1066   : > { %4622 = vadd.xlane.f32.xlu0 %v4621_v3 }
0x1067   : > { %v4620_v4 = vmul.f32 %v4618_v2, %v4618_v2 }
0x1069   : > { %v4624_v45 = vsel %vm761_vm2, %v4620_v4, 0.0 }
0x106a   : > { %4625 = vadd.xlane.f32.xlu1 %v4624_v45 }
0x10f3   : > { %v4623_v5 = vpop.xlane.xlu0 %4622 }
0x10f4   : > { %v4627_v46 = vmul.f32 0.015625, %v4623_v5 }
0x10f6   : > { %v4629_v16 = vadd.f32 1e-05, %v4627_v46 }
0x10f7   : > { %v4626_v9 = vpop.xlane.xlu1 %4625 }
0x10f8   : > { %5776 = vrsqrt.f32 %v4629_v16  ;;  %v4628_v53 = vmul.f32 0.015625, %v4626_v9 }
0x10fa   : > { %v4630_v10 = vadd.f32 1e-05, %v4628_v53 }
0x10fc   : > { %5778 = vrsqrt.f32 %v4630_v10 }
0x1102   : > { %v5777_v11 = vpop.eup %5776 }
0x1103   : > { %v4633_v34 = vmul.f32 %v5777_v11, %v4617_v0 }
0x1105   : > { %v4639_v15 = vmul.f32 %v4638_v26, %v4633_v34 }
0x1106   : > { %v5779_v7 = vpop.eup %5778 }
0x1107   : > { %v4645_v17 = vadd.f32 %v4644_v14, %v4639_v15  ;;  %v4634_v12 = vmul.f32 %v5779_v7, %v4618_v2  ;;  %4652 = sbr.rel (%p5186_p5) target bundleno = 4806 (0x12c6), region = 88 }
0x1109   : > { %4647 = vst.msk [vmem:[#allocation2] sm:$0xff] %vm761_vm2, %v4645_v17  ;;  %v4640_v13 = vmul.f32 %v4638_v26, %v4634_v12 }
0x110b   : > { %v4646_v31 = vadd.f32 %v4644_v14, %v4640_v13 }
0x110d   : > { %4648 = vst.msk [vmem:[#allocation2 + $0x8] sm:$0xff] %vm761_vm2, %v4646_v31 }
0x1114   : > { %v4654_v25 = vld [vmem:[#allocation2 + $0x7] ss:$8 sm:$0x3] }
0x1115   : > { %v4655_v27 = vpack.c.bf16 %v4654_v25, %v4654_v25 }
0x1117   : > { %5551 = vmatmul.mubr.msk.bf16.vlgmr.msra.gmra.mrb[0].mxu0 %vm761_vm2, %v4655_v27 }
0x11ea   : > { %v4732_v28 = vpop.f32.mrb[0].mxu0 }
0x11eb   : > { %v4733_v38 = vadd.f32 %v5187_v37, %v4732_v28  ;;  %v5552_v50 = vpop.f32.mrb[1].mxu0 }
0x11ec   : > { %v4735_v23 = vpop.f32.mrb[2].mxu0 }
0x11ed   : > { %v4738_v41 = vmax.f32 %v4733_v38, 0.0  ;;  %v5553_v29 = vpop.f32.mrb[3].mxu0 }
0x11ef   : > { %5563 = vmatmul.mubr.msk.f32.vlgmr.msra.gmra.mrb[0].mxu1 %vm4750_vm7, %v4738_v41 }
0x12c2   : > { %v4820_v44 = vpop.f32.mrb[0].mxu1 }
0x12c3   : > { %v4821_v24 = vadd.f32 %v5193_v42, %v4820_v44  ;;  %v5564_v47 = vpop.f32.mrb[1].mxu1 }
0x12c5   : > { %4825 = vst.msk [vmem:[%s6528_s5] sm:$0x3] %vm4824_vm8, %v4821_v24 }
0x12c6 PF: > { %s6529_s6 = sld [smem:[#allocation4_spill]] }
0x12cc   : > { %s27_s20 = sadd.s32 1, %s6529_s6  }
0x12cd   : > { %p24_p6 = scmp.ge.s32.totalorder %s27_s20, 4  }
0x12cf   :  { %26 = sbr.rel (!%p24_p6) target bundleno = 6 (0x6), region = 133 }

</bundles_post_ra>
